<compile_context>
chip_gen: v5e
topology: v5e:2x2
jax: 0.10.0
libtpu: 0.0.40
codegen_flags: <defaults>
</compile_context>

<pallas_src>
import functools

import jax
import jax.numpy as jnp
from jax.experimental import pallas as pl
from jax.experimental.pallas import tpu as pltpu

LATENT_DIMS = 3
IN_FEATURES = 784   # 1 * 28 * 28, fixed by nn.Linear(784, 512)
HIDDEN = 512
HEAD_PAD = 128      # lane-dense width for each latent head (mu / pre_sigma)


def _round_up(x, m):
    return ((x + m - 1) // m) * m


def vae_encoder_kernel(x_ref, w1_ref, b1_ref, w23_ref, b23_ref, eps_ref,
                       z_ref, kl_ref, *, batch, tile_b, latent, head_pad):
    # x: (tile_b, 784) bf16   w1: (784, 512) bf16   b1: (1, 512) f32
    x = x_ref[...]
    h = jnp.dot(x, w1_ref[...], preferred_element_type=jnp.float32)
    h = jnp.maximum(h + b1_ref[...], 0.0)                       # F.relu

    # Fused mu/pre_sigma head: (tile_b, 512) @ (512, 2*head_pad) -> split
    # into two lane-aligned 128-wide slabs.
    head = jnp.dot(h.astype(jnp.bfloat16), w23_ref[...],
                   preferred_element_type=jnp.float32) + b23_ref[...]
    mu = head[:, :head_pad]              # padded lanes are exactly 0
    pre_sigma = head[:, head_pad:]       # padded lanes are exactly 0
    sigma = jnp.exp(pre_sigma)           # torch.exp (padded lanes -> 1)

    # z = mu + sigma * eps   (eps padded lanes are 0 -> z padded lanes are 0)
    z_ref[...] = mu + sigma * eps_ref[...]

    # KL: sum(sigma^2 + mu^2 - pre_sigma - 1/2) over valid lanes & real rows.
    # (log(exp(pre_sigma)) == pre_sigma.)
    row = (pl.program_id(0) * tile_b
           + jax.lax.broadcasted_iota(jnp.int32, (tile_b, head_pad), 0))
    lane = jax.lax.broadcasted_iota(jnp.int32, (tile_b, head_pad), 1)
    valid = (lane < latent) & (row < batch)
    kl_terms = jnp.where(valid, sigma * sigma + mu * mu - pre_sigma - 0.5, 0.0)
    # Lane-wise partial sum, kept (8, 128)-shaped for an unmasked lane-dense
    # store; final scalar reduction happens in the wrapper.
    kl_ref[...] = kl_terms.reshape(tile_b // 8, 8, head_pad).sum(axis=0)


def prepare_params(w1, b1, w2, b2, w3, b3):
    """Fuse / pad / cast raw (torch-layout-equivalent) params for the kernel."""
    w1p = w1.astype(jnp.bfloat16)                                  # (784, 512)
    b1p = b1.reshape(1, HIDDEN).astype(jnp.float32)                # (1, 512)
    w23 = jnp.zeros((HIDDEN, 2 * HEAD_PAD), jnp.float32)
    w23 = w23.at[:, :LATENT_DIMS].set(w2)
    w23 = w23.at[:, HEAD_PAD:HEAD_PAD + LATENT_DIMS].set(w3)
    b23 = jnp.zeros((1, 2 * HEAD_PAD), jnp.float32)
    b23 = b23.at[0, :LATENT_DIMS].set(b2.reshape(-1))
    b23 = b23.at[0, HEAD_PAD:HEAD_PAD + LATENT_DIMS].set(b3.reshape(-1))
    return w1p, b1p, w23.astype(jnp.bfloat16), b23


def variational_encoder_forward(x_nchw, params, eps, *, tile_b=128):
    """Runs the VariationalEncoder forward pass. Returns (z, kl)."""
    w1, b1, w23, b23 = params
    B = x_nchw.shape[0]
    # glue: torch.flatten(x, start_dim=1); bf16 for the MXU
    x_flat = x_nchw.reshape(B, -1).astype(jnp.bfloat16)
    assert x_flat.shape[1] == IN_FEATURES

    tb = min(tile_b, _round_up(B, 8))
    b_pad = _round_up(B, tb)
    num_blocks = b_pad // tb
    if b_pad != B:
        x_flat = jnp.pad(x_flat, ((0, b_pad - B), (0, 0)))
    # eps, zero-padded to a lane-dense (b_pad, 128) slab
    eps_pad = jnp.zeros((b_pad, HEAD_PAD), jnp.float32)
    eps_pad = eps_pad.at[:B, :LATENT_DIMS].set(eps.astype(jnp.float32))

    kernel = functools.partial(vae_encoder_kernel, batch=B, tile_b=tb,
                               latent=LATENT_DIMS, head_pad=HEAD_PAD)

    z_pad, kl_part = pl.pallas_call(
        kernel,
        out_shape=(
            jax.ShapeDtypeStruct((b_pad, HEAD_PAD), jnp.float32),        # z (padded)
            jax.ShapeDtypeStruct((num_blocks * 8, HEAD_PAD), jnp.float32),  # kl partials
        ),
        grid_spec=pltpu.PrefetchScalarGridSpec(
            num_scalar_prefetch=0,
            grid=(num_blocks,),
            in_specs=[
                pl.BlockSpec((tb, IN_FEATURES), lambda i: (i, 0)),       # x
                pl.BlockSpec((IN_FEATURES, HIDDEN), lambda i: (0, 0)),   # w1 (resident)
                pl.BlockSpec((1, HIDDEN), lambda i: (0, 0)),             # b1
                pl.BlockSpec((HIDDEN, 2 * HEAD_PAD), lambda i: (0, 0)),  # w23 (resident)
                pl.BlockSpec((1, 2 * HEAD_PAD), lambda i: (0, 0)),       # b23
                pl.BlockSpec((tb, HEAD_PAD), lambda i: (i, 0)),          # eps
            ],
            out_specs=[
                pl.BlockSpec((tb, HEAD_PAD), lambda i: (i, 0)),          # z
                pl.BlockSpec((8, HEAD_PAD), lambda i: (i, 0)),           # kl partial
            ],
        ),
        compiler_params=pltpu.CompilerParams(
            dimension_semantics=("parallel",)),
    )(x_flat, w1, b1, w23, b23, eps_pad)

    z = z_pad[:B, :LATENT_DIMS]
    kl = jnp.sum(kl_part)
    return z, kl


def init_raw_params(key):
    """Deterministic init mimicking nn.Linear default: U(-1/sqrt(fan_in), +...)."""
    k1, k2, k3, k4, k5, k6 = jax.random.split(key, 6)

    def uniform(k, shape, fan_in):
        bound = 1.0 / jnp.sqrt(jnp.float32(fan_in))
        return jax.random.uniform(k, shape, jnp.float32, -bound, bound)

    # stored as (in_features, out_features)
    w1 = uniform(k1, (IN_FEATURES, HIDDEN), IN_FEATURES)
    b1 = uniform(k2, (HIDDEN,), IN_FEATURES)
    w2 = uniform(k3, (HIDDEN, LATENT_DIMS), HIDDEN)
    b2 = uniform(k4, (LATENT_DIMS,), HIDDEN)
    w3 = uniform(k5, (HIDDEN, LATENT_DIMS), HIDDEN)
    b3 = uniform(k6, (LATENT_DIMS,), HIDDEN)
    return (w1, b1, w2, b2, w3, b3)


if __name__ == "__main__":
    key = jax.random.PRNGKey(0)
    k_params, k_x, k_eps = jax.random.split(key, 3)

    B = 8
    # NCHW input, MNIST-like: (B, 1, 28, 28) -> flatten -> 784 features
    x = jax.random.normal(k_x, (B, 1, 28, 28), dtype=jnp.float32)
    raw = init_raw_params(k_params)
    params = prepare_params(*raw)
    eps = jax.random.normal(k_eps, (B, LATENT_DIMS), dtype=jnp.float32)

    z, kl = variational_encoder_forward(x, params, eps)
    jax.block_until_ready((z, kl))

    # sanity check against a pure-JAX reference mirroring the kernel numerics
    # (bf16 matmuls, f32 accumulation)
    w1f, b1f, w2f, b2f, w3f, b3f = raw
    xf = x.reshape(B, -1)
    h = jnp.maximum(
        jnp.dot(xf.astype(jnp.bfloat16), w1f.astype(jnp.bfloat16),
                preferred_element_type=jnp.float32) + b1f[None, :], 0.0)
    hb = h.astype(jnp.bfloat16)
    mu = jnp.dot(hb, w2f.astype(jnp.bfloat16),
                 preferred_element_type=jnp.float32) + b2f[None, :]
    pre = jnp.dot(hb, w3f.astype(jnp.bfloat16),
                  preferred_element_type=jnp.float32) + b3f[None, :]
    sigma = jnp.exp(pre)
    z_ref = mu + sigma * eps
    kl_ref = jnp.sum(sigma ** 2 + mu ** 2 - pre - 0.5)

    assert jnp.allclose(z, z_ref, atol=1e-3, rtol=1e-3), (z, z_ref)
    assert jnp.allclose(kl, kl_ref, atol=1e-2, rtol=1e-3), (kl, kl_ref)

    print("KERNEL_OK")
</pallas_src>

<mosaic_0001>
module attributes {stable_mosaic.version = 11 : i64} {
  func.func @vae_encoder_kernel(%arg0: i32, %arg1: memref<8x784xbf16, #tpu.memory_space<vmem>>, %arg2: memref<784x512xbf16, #tpu.memory_space<vmem>>, %arg3: memref<1x512xf32, #tpu.memory_space<vmem>>, %arg4: memref<512x256xbf16, #tpu.memory_space<vmem>>, %arg5: memref<1x256xf32, #tpu.memory_space<vmem>>, %arg6: memref<8x128xf32, #tpu.memory_space<vmem>>, %arg7: memref<8x128xf32, #tpu.memory_space<vmem>>, %arg8: memref<8x128xf32, #tpu.memory_space<vmem>>) attributes {dimension_semantics = [#tpu.dimension_semantics<parallel>], iteration_bounds = array<i64: 1>, scalar_prefetch = 0 : i64, scratch_operands = 0 : i64, tpu.core_type = #tpu.core_type<tc>, window_params = [{transform_indices = @transform_0, window_bounds = array<i64: 8, 784>}, {pipeline_mode = #tpu.pipeline_mode<synchronous>, transform_indices = @transform_1, window_bounds = array<i64: 784, 512>}, {pipeline_mode = #tpu.pipeline_mode<synchronous>, transform_indices = @transform_2, window_bounds = array<i64: 1, 512>}, {pipeline_mode = #tpu.pipeline_mode<synchronous>, transform_indices = @transform_3, window_bounds = array<i64: 512, 256>}, {pipeline_mode = #tpu.pipeline_mode<synchronous>, transform_indices = @transform_4, window_bounds = array<i64: 1, 256>}, {transform_indices = @transform_5, window_bounds = array<i64: 8, 128>}, {transform_indices = @transform_6, window_bounds = array<i64: 8, 128>}, {transform_indices = @transform_7, window_bounds = array<i64: 8, 128>}]} {
    %c0 = arith.constant 0 : index
    %c0_0 = arith.constant 0 : index
    %0 = vector.load %arg1[%c0, %c0_0] : memref<8x784xbf16, #tpu.memory_space<vmem>>, vector<8x784xbf16>
    %c0_1 = arith.constant 0 : index
    %c0_2 = arith.constant 0 : index
    %1 = vector.load %arg2[%c0_1, %c0_2] : memref<784x512xbf16, #tpu.memory_space<vmem>>, vector<784x512xbf16>
    %cst = arith.constant dense<0.000000e+00> : vector<8x512xf32>
    %2 = tpu.matmul %0, %1, %cst {dimension_numbers = #tpu.dot_dimension_numbers<[1], [0], [0], [1], [0, 0, 1, 1], [], []>} : vector<8x784xbf16>, vector<784x512xbf16>, vector<8x512xf32> -> vector<8x512xf32>
    %c0_3 = arith.constant 0 : index
    %c0_4 = arith.constant 0 : index
    %3 = vector.load %arg3[%c0_3, %c0_4] : memref<1x512xf32, #tpu.memory_space<vmem>>, vector<1x512xf32>
    %4 = vector.broadcast %3 : vector<1x512xf32> to vector<8x512xf32>
    %5 = arith.addf %2, %4 : vector<8x512xf32>
    %cst_5 = arith.constant 0.000000e+00 : f32
    %6 = vector.broadcast %cst_5 : f32 to vector<8x512xf32>
    %7 = arith.maximumf %5, %6 : vector<8x512xf32>
    %8 = arith.truncf %7 : vector<8x512xf32> to vector<8x512xbf16>
    %c0_6 = arith.constant 0 : index
    %c0_7 = arith.constant 0 : index
    %9 = vector.load %arg4[%c0_6, %c0_7] : memref<512x256xbf16, #tpu.memory_space<vmem>>, vector<512x256xbf16>
    %cst_8 = arith.constant dense<0.000000e+00> : vector<8x256xf32>
    %10 = tpu.matmul %8, %9, %cst_8 {dimension_numbers = #tpu.dot_dimension_numbers<[1], [0], [0], [1], [0, 0, 1, 1], [], []>} : vector<8x512xbf16>, vector<512x256xbf16>, vector<8x256xf32> -> vector<8x256xf32>
    %c0_9 = arith.constant 0 : index
    %c0_10 = arith.constant 0 : index
    %11 = vector.load %arg5[%c0_9, %c0_10] : memref<1x256xf32, #tpu.memory_space<vmem>>, vector<1x256xf32>
    %12 = vector.broadcast %11 : vector<1x256xf32> to vector<8x256xf32>
    %13 = arith.addf %10, %12 : vector<8x256xf32>
    %14 = vector.extract_strided_slice %13 {offsets = [0, 0], sizes = [8, 128], strides = [1, 1]} : vector<8x256xf32> to vector<8x128xf32>
    %15 = vector.extract_strided_slice %13 {offsets = [0, 128], sizes = [8, 128], strides = [1, 1]} : vector<8x256xf32> to vector<8x128xf32>
    %16 = math.exp %15 : vector<8x128xf32>
    %c0_11 = arith.constant 0 : index
    %c0_12 = arith.constant 0 : index
    %17 = vector.load %arg6[%c0_11, %c0_12] : memref<8x128xf32, #tpu.memory_space<vmem>>, vector<8x128xf32>
    %18 = arith.mulf %16, %17 : vector<8x128xf32>
    %19 = arith.addf %14, %18 : vector<8x128xf32>
    %c0_13 = arith.constant 0 : index
    %c0_14 = arith.constant 0 : index
    %20 = vector.load %arg7[%c0_13, %c0_14] : memref<8x128xf32, #tpu.memory_space<vmem>>, vector<8x128xf32>
    tpu.vector_store %arg7[%c0_13, %c0_14], %19 {strides = array<i32>} : memref<8x128xf32, #tpu.memory_space<vmem>>, vector<8x128xf32>,
    %c8_i32 = arith.constant 8 : i32
    %21 = arith.muli %arg0, %c8_i32 : i32
    %22 = tpu.iota {dimensions = array<i32: 0>} : vector<8x128xi32>
    %23 = vector.broadcast %21 : i32 to vector<8x128xi32>
    %24 = arith.addi %23, %22 : vector<8x128xi32>
    %25 = tpu.iota {dimensions = array<i32: 1>} : vector<8x128xi32>
    %c3_i32 = arith.constant 3 : i32
    %26 = vector.broadcast %c3_i32 : i32 to vector<8x128xi32>
    %27 = arith.cmpi slt, %25, %26 : vector<8x128xi32>
    %c8_i32_15 = arith.constant 8 : i32
    %28 = vector.broadcast %c8_i32_15 : i32 to vector<8x128xi32>
    %29 = arith.cmpi slt, %24, %28 : vector<8x128xi32>
    %30 = arith.andi %27, %29 : vector<8x128xi1>
    %31 = arith.mulf %16, %16 : vector<8x128xf32>
    %32 = arith.mulf %14, %14 : vector<8x128xf32>
    %33 = arith.addf %31, %32 : vector<8x128xf32>
    %34 = arith.subf %33, %15 : vector<8x128xf32>
    %cst_16 = arith.constant 5.000000e-01 : f32
    %35 = vector.broadcast %cst_16 : f32 to vector<8x128xf32>
    %36 = arith.subf %34, %35 : vector<8x128xf32>
    %cst_17 = arith.constant 0.000000e+00 : f32
    %37 = vector.broadcast %cst_17 : f32 to vector<8x128xf32>
    %38 = arith.select %30, %36, %37 : vector<8x128xi1>, vector<8x128xf32>
    %39 = vector.shape_cast %38 : vector<8x128xf32> to vector<1x8x128xf32>
    %cst_18 = arith.constant dense<0.000000e+00> : vector<8x128xf32>
    %40 = vector.multi_reduction <add>, %39, %cst_18 [0] : vector<1x8x128xf32> to vector<8x128xf32>
    %c0_19 = arith.constant 0 : index
    %c0_20 = arith.constant 0 : index
    %41 = vector.load %arg8[%c0_19, %c0_20] : memref<8x128xf32, #tpu.memory_space<vmem>>, vector<8x128xf32>
    tpu.vector_store %arg8[%c0_19, %c0_20], %40 {strides = array<i32>} : memref<8x128xf32, #tpu.memory_space<vmem>>, vector<8x128xf32>,
    return
  }
  func.func @transform_0(%arg0: i32) -> (i32, i32) {
    %c0_i32 = arith.constant 0 : i32
    %c0_i32_0 = arith.constant 0 : i32
    return %arg0, %c0_i32 : i32, i32
  }
  func.func @transform_1(%arg0: i32) -> (i32, i32) {
    %c0_i32 = arith.constant 0 : i32
    %c0_i32_0 = arith.constant 0 : i32
    %c0_i32_1 = arith.constant 0 : i32
    return %c0_i32, %c0_i32_0 : i32, i32
  }
  func.func @transform_2(%arg0: i32) -> (i32, i32) {
    %c0_i32 = arith.constant 0 : i32
    %c0_i32_0 = arith.constant 0 : i32
    %c0_i32_1 = arith.constant 0 : i32
    return %c0_i32, %c0_i32_0 : i32, i32
  }
  func.func @transform_3(%arg0: i32) -> (i32, i32) {
    %c0_i32 = arith.constant 0 : i32
    %c0_i32_0 = arith.constant 0 : i32
    %c0_i32_1 = arith.constant 0 : i32
    return %c0_i32, %c0_i32_0 : i32, i32
  }
  func.func @transform_4(%arg0: i32) -> (i32, i32) {
    %c0_i32 = arith.constant 0 : i32
    %c0_i32_0 = arith.constant 0 : i32
    %c0_i32_1 = arith.constant 0 : i32
    return %c0_i32, %c0_i32_0 : i32, i32
  }
  func.func @transform_5(%arg0: i32) -> (i32, i32) {
    %c0_i32 = arith.constant 0 : i32
    %c0_i32_0 = arith.constant 0 : i32
    return %arg0, %c0_i32 : i32, i32
  }
  func.func @transform_6(%arg0: i32) -> (i32, i32) {
    %c0_i32 = arith.constant 0 : i32
    %c0_i32_0 = arith.constant 0 : i32
    return %arg0, %c0_i32 : i32, i32
  }
  func.func @transform_7(%arg0: i32) -> (i32, i32) {
    %c0_i32 = arith.constant 0 : i32
    %c0_i32_0 = arith.constant 0 : i32
    return %arg0, %c0_i32 : i32, i32
  }
}

</mosaic_0001>

<bundles_post_ra>
// kernel: tpu_custom_call.1
= control target key start
LH: loop header
LB: loop body
LE: loop exit
PB: predicated region body
PF: predicated region fallthrough
CT: control target
= control target key end

     0   :  { %13 = vsyncpa [#allocation3], 0  ;;  %s3891_s0 = inlined_call_operand.hbm [shape: bf16[8,784], index: 0, kind: input, shape index: {}]   ;;  %s3892_s1 = inlined_call_operand.hbm [shape: bf16[784,512], index: 1, kind: input, shape index: {}]   ;;  %s3893_s2 = inlined_call_operand.hbm [shape: f32[1,512], index: 2, kind: input, shape index: {}]   ;;  %s3894_s3 = inlined_call_operand.hbm [shape: bf16[512,256], index: 3, kind: input, shape index: {}]   ;;  %s3895_s4 = inlined_call_operand.vmem [shape: f32[1,256], index: 4, kind: input, shape index: {}]   ;;  %s3896_s5 = inlined_call_operand.hbm [shape: f32[8,128], index: 5, kind: input, shape index: {}]   ;;  %s3897_s6 = inlined_call_operand.hbm [shape: f32[8,128], index: 6, kind: output, shape index: {0}]   ;;  %s3898_s7 = inlined_call_operand.hbm [shape: f32[8,128], index: 7, kind: output, shape index: {1}]  }
   0x1   :  { %14 = vsyncpa [#allocation6], 0 }
   0x2   :  { %15 = vsyncpa [#allocation9], 0 }
   0x3   :  { %16 = vsyncpa [#allocation4], 0  ;;  %s33_s26 = sshll.u32 %s3892_s1, 4  ;;  %s34_s26 = int_to_ptr.hbm [resolvable:$true] %s33_s26 }
   0x4   :  { %17 = vsyncpa [#allocation13], 0  ;;  %s3739_s27 = smov [#allocation5]   ;;  %s57_s8 = sshll.u32 %s3894_s3, 4  ;;  %s58_s8 = int_to_ptr.hbm [resolvable:$true] %s57_s8 }
   0x5   :  { %s35_s28 = sshll.u32 %s3739_s27, 4  ;;  %s3740_s9 = smov 256   ;;  %s36_s28 = int_to_ptr.vmem [resolvable:$true] %s35_s28 }
   0x6   :  { %s3741_s10 = smov 16   ;;  %s3742_s11 = smov [#allocation8]  }
   0x7   :  { %41 = dma.hbm_to_vmem [thread:$0]  %s34_s26, 25088, %s36_s28, [#allocation6], %s3740_s9, %s3740_s9, %s3741_s10  }
   0x8   :  { %s59_s12 = sshll.u32 %s3742_s11, 4  ;;  %s3743_s13 = smov 128   ;;  %s60_s12 = int_to_ptr.vmem [resolvable:$true] %s59_s12 }
   0x9   :  { %s3744_s14 = smov 8   ;;  %s23_s16 = sshll.u32 %s3891_s0, 4  ;;  %s24_s16 = int_to_ptr.hbm [resolvable:$true] %s23_s16 }
   0xa   :  { %65 = dma.hbm_to_vmem [thread:$0]  %s58_s8, 8192, %s60_s12, [#allocation9], %s3743_s13, %s3743_s13, %s3744_s14  }
   0xb   :  { %s3745_s17 = smov [#allocation2]   ;;  %s47_s20 = sshll.u32 %s3893_s2, 4  ;;  %s48_s20 = int_to_ptr.hbm [resolvable:$true] %s47_s20 }
   0xc   :  { %s25_s18 = sshll.u32 %s3745_s17, 4  ;;  %s3746_s21 = smov [#allocation7]   ;;  %s26_s18 = int_to_ptr.vmem [resolvable:$true] %s25_s18 }
   0xd   :  { %28 = dma.hbm_to_vmem [thread:$0]  %s24_s16, 448, %s26_s18, [#allocation3]  }
   0xe   :  { %s49_s22 = sshll.u32 %s3746_s21, 4  ;;  %s73_s25 = sshll.u32 %s3896_s5, 4  ;;  %s50_s22 = int_to_ptr.vmem [resolvable:$true] %s49_s22  ;;  %s74_s25 = int_to_ptr.hbm [resolvable:$true] %s73_s25 }
   0xf   :  { %52 = dma.hbm_to_vmem [thread:$0]  %s48_s20, 64, %s50_s22, [#allocation6]  }
  0x10   :  { %s3747_s0 = smov [#allocation10]  }
  0x11   :  { %s75_s26 = sshll.u32 %s3747_s0, 4  ;;  %s76_s26 = int_to_ptr.vmem [resolvable:$true] %s75_s26 }
  0x12   :  { %78 = dma.hbm_to_vmem [thread:$0]  %s74_s25, 128, %s76_s26, [#allocation9]  }
  0x13   :  { %3729 = dma.done.wait [#allocation3], 448  }
  0x14   :  { %3730 = vsyncadd [#allocation3], 4294966848 }
  0x15   :  { %3731 = dma.done.wait [#allocation6], 25152  }
  0x16   :  { %3732 = vsyncadd [#allocation6], 4294942144 }
  0x17   :  { %3733 = dma.done.wait [#allocation9], 8320  }
  0x18   :  { %3734 = vsyncadd [#allocation9], 4294958976  ;;  %v2357_v0 = vld [vmem:[#allocation5 + $0xe0] sm:$0xf]  ;;  %v3318_v1 = vld [vmem:[#allocation5 + $0xec] sm:$0xf0] }
  0x19   :  { %v2485_v2 = vld [vmem:[#allocation5 + $0x1e0] sm:$0xf]  ;;  %v2358_v3 = vor.u32 %v3318_v1, %v2357_v0  ;;  %v3350_v4 = vld [vmem:[#allocation5 + $0x1ec] sm:$0xf0]  ;;  %vm1314_vm0 = vcmask 130048   ;;  %s2215_s30 = sshll.u32 %s3897_s6, 4  ;;  %s2216_s30 = int_to_ptr.hbm [resolvable:$true] %s2215_s30 }
  0x1a   :  { %v2613_v5 = vld [vmem:[#allocation5 + $0x2e0] sm:$0xf]  ;;  %v3382_v6 = vld [vmem:[#allocation5 + $0x2ec] sm:$0xf0]  ;;  %v2486_v7 = vor.u32 %v3350_v4, %v2485_v2  ;;  %s3749_s8 = smov [#allocation12]   ;;  %s2226_s12 = sshll.u32 %s3898_s7, 4  ;;  %s2227_s12 = int_to_ptr.hbm [resolvable:$true] %s2226_s12 }
  0x1b   :  { %v2614_v8 = vor.u32 %v3382_v6, %v2613_v5  ;;  %v2741_v9 = vld [vmem:[#allocation5 + $0x3e0] sm:$0xf]  ;;  %v3414_v10 = vld [vmem:[#allocation5 + $0x3ec] sm:$0xf0]  ;;  %1318 = vmatpush.bf16.msra.mxu0 %v2358_v3  ;;  %s2224_s9 = sshll.u32 %s3749_s8, 4  ;;  %s2225_s9 = int_to_ptr.vmem [resolvable:$true] %s2224_s9 }
  0x1c   :  { %v2341_v11 = vld [vmem:[#allocation5 + $0xc0] sm:$0xf]  ;;  %v2742_v12 = vor.u32 %v3414_v10, %v2741_v9  ;;  %v3314_v13 = vld [vmem:[#allocation5 + $0xcc] sm:$0xf0]  ;;  %1331 = vmatpush.bf16.msra.mxu1 %v2486_v7 }
  0x1d   :  { %v2469_v14 = vld [vmem:[#allocation5 + $0x1c0] sm:$0xf]  ;;  %v3346_v15 = vld [vmem:[#allocation5 + $0x1cc] sm:$0xf0]  ;;  %1344 = vmatpush.bf16.msra.mxu2 %v2614_v8  ;;  %v2342_v16 = vor.u32 %v3314_v13, %v2341_v11 }
  0x1e   :  { %v2470_v17 = vor.u32 %v3346_v15, %v2469_v14  ;;  %v2597_v18 = vld [vmem:[#allocation5 + $0x2c0] sm:$0xf]  ;;  %v3378_v19 = vld [vmem:[#allocation5 + $0x2cc] sm:$0xf0]  ;;  %1357 = vmatpush.bf16.msra.mxu3 %v2742_v12 }
  0x1f   :  { %v2725_v20 = vld [vmem:[#allocation5 + $0x3c0] sm:$0xf]  ;;  %v2598_v21 = vor.u32 %v3378_v19, %v2597_v18  ;;  %v3410_v22 = vld [vmem:[#allocation5 + $0x3cc] sm:$0xf0]  ;;  %1319 = vmatpush.bf16.msra.mxu0 %v2342_v16 }
  0x20   :  { %v2325_v23 = vld [vmem:[#allocation5 + $0xa0] sm:$0xf]  ;;  %v3310_v24 = vld [vmem:[#allocation5 + $0xac] sm:$0xf0]  ;;  %v2726_v25 = vor.u32 %v3410_v22, %v2725_v20  ;;  %1332 = vmatpush.bf16.msra.mxu1 %v2470_v17 }
  0x21   :  { %v2453_v26 = vld [vmem:[#allocation5 + $0x1a0] sm:$0xf]  ;;  %v3342_v27 = vld [vmem:[#allocation5 + $0x1ac] sm:$0xf0]  ;;  %v2326_v29 = vor.u32 %v3310_v24, %v2325_v23  ;;  %1345 = vmatpush.bf16.msra.mxu2 %v2598_v21 }
  0x22   :  { %v2581_v28 = vld [vmem:[#allocation5 + $0x2a0] sm:$0xf]  ;;  %v3374_v30 = vld [vmem:[#allocation5 + $0x2ac] sm:$0xf0]  ;;  %v2454_v33 = vor.u32 %v3342_v27, %v2453_v26  ;;  %1358 = vmatpush.bf16.msra.mxu3 %v2726_v25 }
  0x23   :  { %v2709_v31 = vld [vmem:[#allocation5 + $0x3a0] sm:$0xf]  ;;  %v3406_v32 = vld [vmem:[#allocation5 + $0x3ac] sm:$0xf0]  ;;  %v2582_v34 = vor.u32 %v3374_v30, %v2581_v28  ;;  %1320 = vmatpush.bf16.msra.mxu0 %v2326_v29 }
  0x24   :  { %v2309_v35 = vld [vmem:[#allocation5 + $0x80] sm:$0xf]  ;;  %v3306_v36 = vld [vmem:[#allocation5 + $0x8c] sm:$0xf0]  ;;  %v2710_v38 = vor.u32 %v3406_v32, %v2709_v31  ;;  %1333 = vmatpush.bf16.msra.mxu1 %v2454_v33 }
  0x25   :  { %v2437_v37 = vld [vmem:[#allocation5 + $0x180] sm:$0xf]  ;;  %v3338_v39 = vld [vmem:[#allocation5 + $0x18c] sm:$0xf0]  ;;  %v2310_v44 = vor.u32 %v3306_v36, %v2309_v35  ;;  %1346 = vmatpush.bf16.msra.mxu2 %v2582_v34  ;;  %v3316_v34 = vld [vmem:[#allocation5 + $0xe4] sm:$0xf] }
  0x26   :  { %v2565_v40 = vld [vmem:[#allocation5 + $0x280] sm:$0xf]  ;;  %v3370_v41 = vld [vmem:[#allocation5 + $0x28c] sm:$0xf0]  ;;  %v2438_v45 = vor.u32 %v3338_v39, %v2437_v37  ;;  %1359 = vmatpush.bf16.msra.mxu3 %v2710_v38  ;;  %v2359_v35 = vld [vmem:[#allocation5 + $0xf0] sm:$0xf0] }
  0x27   :  { %v2693_v42 = vld [vmem:[#allocation5 + $0x380] sm:$0xf]  ;;  %v3402_v43 = vld [vmem:[#allocation5 + $0x38c] sm:$0xf0]  ;;  %v2566_v46 = vor.u32 %v3370_v41, %v2565_v40  ;;  %1321 = vmatpush.bf16.msra.mxu0 %v2310_v44  ;;  %v100_v37 = vld [vmem:[#allocation2] sm:$0xff] }
  0x28   :  { %v2293_v47 = vld [vmem:[#allocation5 + $0x60] sm:$0xf]  ;;  %v3302_v48 = vld [vmem:[#allocation5 + $0x6c] sm:$0xf0]  ;;  %v2694_v50 = vor.u32 %v3402_v43, %v2693_v42  ;;  %1334 = vmatpush.bf16.msra.mxu1 %v2438_v45  ;;  %v314_v41 = vunpack.c.l.b16 %v100_v37 }
  0x29   :  { %v2421_v49 = vld [vmem:[#allocation5 + $0x160] sm:$0xf]  ;;  %v3334_v51 = vld [vmem:[#allocation5 + $0x16c] sm:$0xf0]  ;;  %v2294_v56 = vor.u32 %v3302_v48, %v2293_v47  ;;  %1347 = vmatpush.bf16.msra.mxu2 %v2566_v46  ;;  %v3348_v46 = vld [vmem:[#allocation5 + $0x1e4] sm:$0xf] }
  0x2a   :  { %v2549_v52 = vld [vmem:[#allocation5 + $0x260] sm:$0xf]  ;;  %v3366_v53 = vld [vmem:[#allocation5 + $0x26c] sm:$0xf0]  ;;  %v2422_v57 = vor.u32 %v3334_v51, %v2421_v49  ;;  %1360 = vmatpush.bf16.msra.mxu3 %v2694_v50  ;;  %v2487_v47 = vld [vmem:[#allocation5 + $0x1f0] sm:$0xf0]  ;;  %v2362_v49 = vor.u32 %v3316_v34, %v2359_v35 }
  0x2b   :  { %v2677_v54 = vld [vmem:[#allocation5 + $0x360] sm:$0xf]  ;;  %v3398_v55 = vld [vmem:[#allocation5 + $0x36c] sm:$0xf0]  ;;  %v2550_v58 = vor.u32 %v3366_v53, %v2549_v52  ;;  %1322 = vmatpush.bf16.msra.mxu0 %v2294_v56  ;;  %v2343_v56 = vld [vmem:[#allocation5 + $0xd0] sm:$0xf0] }
  0x2c   :  { %v2277_v59 = vld [vmem:[#allocation5 + $0x40] sm:$0xf]  ;;  %v3298_v60 = vld [vmem:[#allocation5 + $0x4c] sm:$0xf0]  ;;  %v2678_v62 = vor.u32 %v3398_v55, %v2677_v54  ;;  %1335 = vmatpush.bf16.msra.mxu1 %v2422_v57  ;;  %v3312_v55 = vld [vmem:[#allocation5 + $0xc4] sm:$0xf]  ;;  %v3807_v57 = vpack.c.b16 %v314_v41, %v314_v41 }
  0x2d   :  { %v2405_v61 = vld [vmem:[#allocation5 + $0x140] sm:$0xf]  ;;  %v3330_v63 = vld [vmem:[#allocation5 + $0x14c] sm:$0xf0]  ;;  %v2278_v4 = vor.u32 %v3298_v60, %v2277_v59  ;;  %1348 = vmatpush.bf16.msra.mxu2 %v2550_v58  ;;  %v315_v58 = vunpack.c.h.b16 %v100_v37  ;;  %v2295_v34 = vld [vmem:[#allocation5 + $0x70] sm:$0xf0] }
  0x2e   :  { %v2533_v0 = vld [vmem:[#allocation5 + $0x240] sm:$0xf]  ;;  %v3362_v1 = vld [vmem:[#allocation5 + $0x24c] sm:$0xf0]  ;;  %v2406_v5 = vor.u32 %v3330_v63, %v2405_v61  ;;  %1361 = vmatpush.bf16.msra.mxu3 %v2678_v62  ;;  %v2490_v61 = vor.u32 %v3348_v46, %v2487_v47  ;;  %v3344_v63 = vld [vmem:[#allocation5 + $0x1c4] sm:$0xf] }
  0x2f   :  { %v2661_v2 = vld [vmem:[#allocation5 + $0x340] sm:$0xf]  ;;  %v3394_v3 = vld [vmem:[#allocation5 + $0x34c] sm:$0xf0]  ;;  %v2534_v6 = vor.u32 %v3362_v1, %v2533_v0  ;;  %1323 = vmatpush.bf16.msra.mxu0 %v2278_v4  ;;  %v2471_v0 = vld [vmem:[#allocation5 + $0x1d0] sm:$0xf0] }
  0x30   :  { %v2261_v7 = vld [vmem:[#allocation5 + $0x20] sm:$0xf]  ;;  %v3294_v8 = vld [vmem:[#allocation5 + $0x2c] sm:$0xf0]  ;;  %v2662_v10 = vor.u32 %v3394_v3, %v2661_v2  ;;  %1336 = vmatpush.bf16.msra.mxu1 %v2406_v5  ;;  %v2346_v2 = vor.u32 %v3312_v55, %v2343_v56  ;;  %v3296_v46 = vld [vmem:[#allocation5 + $0x44] sm:$0xf] }
  0x31   :  { %v2389_v9 = vld [vmem:[#allocation5 + $0x120] sm:$0xf]  ;;  %v3326_v11 = vld [vmem:[#allocation5 + $0x12c] sm:$0xf0]  ;;  %v2262_v17 = vor.u32 %v3294_v8, %v2261_v7  ;;  %1349 = vmatpush.bf16.msra.mxu2 %v2534_v6  ;;  %v3308_v7 = vld [vmem:[#allocation5 + $0xa4] sm:$0xf] }
  0x32   :  { %v2517_v12 = vld [vmem:[#allocation5 + $0x220] sm:$0xf]  ;;  %v3358_v13 = vld [vmem:[#allocation5 + $0x22c] sm:$0xf0]  ;;  %v2390_v21 = vor.u32 %v3326_v11, %v2389_v9  ;;  %1362 = vmatpush.bf16.msra.mxu3 %v2662_v10  ;;  %v2327_v8 = vld [vmem:[#allocation5 + $0xb0] sm:$0xf0]  ;;  %v3813_v9 = vpack.c.b16 %v315_v58, %v315_v58  ;;  %v2474_v10 = vor.u32 %v3344_v63, %v2471_v0 }
  0x33   :  { %v2645_v14 = vld [vmem:[#allocation5 + $0x320] sm:$0xf]  ;;  %v3390_v15 = vld [vmem:[#allocation5 + $0x32c] sm:$0xf0]  ;;  %v2518_v22 = vor.u32 %v3358_v13, %v2517_v12  ;;  %1324 = vmatpush.bf16.msra.mxu0 %v2262_v17  ;;  %v3340_v12 = vld [vmem:[#allocation5 + $0x1a4] sm:$0xf] }
  0x34   :  { %v2245_v16 = vld [vmem:[#allocation5] sm:$0xf]  ;;  %v3290_v18 = vld [vmem:[#allocation5 + $0xc] sm:$0xf0]  ;;  %v2646_v26 = vor.u32 %v3390_v15, %v2645_v14  ;;  %1337 = vmatpush.bf16.msra.mxu1 %v2390_v21  ;;  %v2455_v13 = vld [vmem:[#allocation5 + $0x1b0] sm:$0xf0]  ;;  %v2330_v15 = vor.u32 %v3308_v7, %v2327_v8 }
  0x35   :  { %v2373_v19 = vld [vmem:[#allocation5 + $0x100] sm:$0xf]  ;;  %v3322_v20 = vld [vmem:[#allocation5 + $0x10c] sm:$0xf0]  ;;  %v2246_v33 = vor.u32 %v3290_v18, %v2245_v16  ;;  %1350 = vmatpush.bf16.msra.mxu2 %v2518_v22  ;;  %v2311_v21 = vld [vmem:[#allocation5 + $0x90] sm:$0xf0] }
  0x36   :  { %v2501_v23 = vld [vmem:[#allocation5 + $0x200] sm:$0xf]  ;;  %v3354_v24 = vld [vmem:[#allocation5 + $0x20c] sm:$0xf0]  ;;  %v2374_v38 = vor.u32 %v3322_v20, %v2373_v19  ;;  %1363 = vmatpush.bf16.msra.mxu3 %v2646_v26  ;;  %v3304_v20 = vld [vmem:[#allocation5 + $0x84] sm:$0xf] }
  0x37   :  { %v101_v25 = vld [vmem:[#allocation2 + $0x8] sm:$0xff]  ;;  %v2629_v27 = vld [vmem:[#allocation5 + $0x300] sm:$0xf]  ;;  %v2502_v39 = vor.u32 %v3354_v24, %v2501_v23  ;;  %1325 = vmatpush.bf16.msra.mxu0 %v2246_v33  ;;  %v103_v22 = vld [vmem:[#allocation2 + $0x18] sm:$0xf]  ;;  %v2458_v23 = vor.u32 %v3340_v12, %v2455_v13 }
  0x38   :  { %v3386_v28 = vld [vmem:[#allocation5 + $0x30c] sm:$0xf0]  ;;  %v2869_v29 = vld [vmem:[#allocation5 + $0x4e0] sm:$0xf]  ;;  %v316_v36 = vunpack.c.l.b16 %v101_v25  ;;  %v317_v42 = vunpack.c.h.b16 %v101_v25  ;;  %1338 = vmatpush.bf16.msra.mxu1 %v2374_v38  ;;  %v3336_v25 = vld [vmem:[#allocation5 + $0x184] sm:$0xf]  ;;  %v320_v35 = vunpack.c.l.b16 %v103_v22 }
  0x39   :  { %v3446_v30 = vld [vmem:[#allocation5 + $0x4ec] sm:$0xf0]  ;;  %v2997_v31 = vld [vmem:[#allocation5 + $0x5e0] sm:$0xf]  ;;  %v2630_v43 = vor.u32 %v3386_v28, %v2629_v27  ;;  %1351 = vmatpush.bf16.msra.mxu2 %v2502_v39  ;;  %v2439_v26 = vld [vmem:[#allocation5 + $0x190] sm:$0xf0]  ;;  %v2314_v28 = vor.u32 %v3304_v20, %v2311_v21 }
  0x3a   :  { %v3478_v32 = vld [vmem:[#allocation5 + $0x5ec] sm:$0xf0]  ;;  %v3013_v40 = vld [vmem:[#allocation5 + $0x600] sm:$0xf]  ;;  %v2870_v44 = vor.u32 %v3446_v30, %v2869_v29  ;;  %v3805_v53 = vpack.c.b16 %v316_v36, %v316_v36  ;;  %v3809_v60 = vpack.c.b16 %v317_v42, %v317_v42  ;;  %1326 = vmatmul.bf16.vlgmr.msra.gmra.mxu0 %v3807_v57  ;;  %v3300_v33 = vld [vmem:[#allocation5 + $0x64] sm:$0xf]  ;;  %v2442_v36 = vor.u32 %v3336_v25, %v2439_v26 }
  0x3b   :  { %v3482_v45 = vld [vmem:[#allocation5 + $0x60c] sm:$0xf0]  ;;  %v2998_v48 = vor.u32 %v3478_v32, %v2997_v31  ;;  %v2853_v50 = vld [vmem:[#allocation5 + $0x4c0] sm:$0xf]  ;;  %1364 = vmatpush.bf16.msra.mxu3 %v2630_v43  ;;  %1339 = vmatmul.bf16.vlgmr.msra.gmra.mxu1 %v3813_v9  ;;  %v3332_v38 = vld [vmem:[#allocation5 + $0x164] sm:$0xf]  ;;  %v2298_v41 = vor.u32 %v3300_v33, %v2295_v34 }
  0x3c   :  { %v3442_v51 = vld [vmem:[#allocation5 + $0x4cc] sm:$0xf0]  ;;  %v2981_v52 = vld [vmem:[#allocation5 + $0x5c0] sm:$0xf]  ;;  %v3014_v59 = vor.u32 %v3482_v45, %v3013_v40  ;;  %1370 = vmatpush.bf16.msrb.mxu0 %v2870_v44  ;;  %1352 = vmatmul.bf16.vlgmr.msra.gmra.mxu2 %v3805_v53  ;;  %v2423_v39 = vld [vmem:[#allocation5 + $0x170] sm:$0xf0] }
  0x3d   :  { %v3474_v54 = vld [vmem:[#allocation5 + $0x5cc] sm:$0xf0]  ;;  %v2854_v62 = vor.u32 %v3442_v51, %v2853_v50  ;;  %1383 = vmatpush.bf16.msrb.mxu1 %v2998_v48  ;;  %v2837_v3 = vld [vmem:[#allocation5 + $0x4a0] sm:$0xf]  ;;  %v2279_v47 = vld [vmem:[#allocation5 + $0x50] sm:$0xf0]  ;;  %v3817_v48 = vpack.c.b16 %v320_v35, %v320_v35 }
  0x3e   :  { %v2982_v1 = vor.u32 %v3474_v54, %v2981_v52  ;;  %v3438_v4 = vld [vmem:[#allocation5 + $0x4ac] sm:$0xf0]  ;;  %v2965_v5 = vld [vmem:[#allocation5 + $0x5a0] sm:$0xf]  ;;  %1403 = vmatpush.bf16.msrb.mxu2 %v3014_v59  ;;  %1365 = vmatmul.bf16.vlgmr.msra.gmra.mxu3 %v3809_v60  ;;  %v3328_v51 = vld [vmem:[#allocation5 + $0x144] sm:$0xf]  ;;  %v2282_v55 = vor.u32 %v3296_v46, %v2279_v47 }
  0x3f   :  { %1409 = vmatpush.bf16.msrb.mxu3 %v2362_v49  ;;  %v3470_v6 = vld [vmem:[#allocation5 + $0x5ac] sm:$0xf0]  ;;  %v2838_v11 = vor.u32 %v3438_v4, %v2837_v3  ;;  %v2821_v16 = vld [vmem:[#allocation5 + $0x480] sm:$0xf]  ;;  %v2426_v49 = vor.u32 %v3332_v38, %v2423_v39  ;;  %v2407_v52 = vld [vmem:[#allocation5 + $0x150] sm:$0xf0] }
  0x40   :  { %1371 = vmatpush.bf16.msrb.mxu0 %v2854_v62  ;;  %v2966_v14 = vor.u32 %v3470_v6, %v2965_v5  ;;  %v3434_v17 = vld [vmem:[#allocation5 + $0x48c] sm:$0xf0]  ;;  %v2949_v18 = vld [vmem:[#allocation5 + $0x580] sm:$0xf]  ;;  %v3292_v62 = vld [vmem:[#allocation5 + $0x24] sm:$0xf] }
  0x41   :  { %1384 = vmatpush.bf16.msrb.mxu1 %v2982_v1  ;;  %v3466_v19 = vld [vmem:[#allocation5 + $0x58c] sm:$0xf0]  ;;  %v2822_v24 = vor.u32 %v3434_v17, %v2821_v16  ;;  %v2805_v29 = vld [vmem:[#allocation5 + $0x460] sm:$0xf]  ;;  %v2263_v63 = vld [vmem:[#allocation5 + $0x30] sm:$0xf0]  ;;  %v2410_v1 = vor.u32 %v3328_v51, %v2407_v52 }
  0x42   :  { %1422 = vmatpush.bf16.msra.mxu2 %v2490_v61  ;;  %v2950_v27 = vor.u32 %v3466_v19, %v2949_v18  ;;  %v3430_v30 = vld [vmem:[#allocation5 + $0x46c] sm:$0xf0]  ;;  %v2933_v31 = vld [vmem:[#allocation5 + $0x560] sm:$0xf]  ;;  %v3324_v0 = vld [vmem:[#allocation5 + $0x124] sm:$0xf]  ;;  %v2266_v7 = vor.u32 %v3292_v62, %v2263_v63 }
  0x43   :  { %1410 = vmatpush.bf16.msrb.mxu3 %v2346_v2  ;;  %v3462_v32 = vld [vmem:[#allocation5 + $0x56c] sm:$0xf0]  ;;  %v2806_v37 = vor.u32 %v3430_v30, %v2805_v29  ;;  %v2789_v42 = vld [vmem:[#allocation5 + $0x440] sm:$0xf]  ;;  %v2391_v3 = vld [vmem:[#allocation5 + $0x130] sm:$0xf0] }
  0x44   :  { %1372 = vmatpush.bf16.msrb.mxu0 %v2838_v11  ;;  %v2934_v40 = vor.u32 %v3462_v32, %v2933_v31  ;;  %v3426_v43 = vld [vmem:[#allocation5 + $0x44c] sm:$0xf0]  ;;  %v2917_v44 = vld [vmem:[#allocation5 + $0x540] sm:$0xf]  ;;  %v102_v5 = vld [vmem:[#allocation2 + $0x10] sm:$0xff]  ;;  %v2394_v19 = vor.u32 %v3324_v0, %v2391_v3 }
  0x45   :  { %1385 = vmatpush.bf16.msrb.mxu1 %v2966_v14  ;;  %v3458_v45 = vld [vmem:[#allocation5 + $0x54c] sm:$0xf0]  ;;  %v2790_v50 = vor.u32 %v3426_v43, %v2789_v42  ;;  %v2773_v56 = vld [vmem:[#allocation5 + $0x420] sm:$0xf]  ;;  %v3288_v12 = vld [vmem:[#allocation5 + $0x4] sm:$0xf]  ;;  %v318_v18 = vunpack.c.l.b16 %v102_v5 }
  0x46   :  { %1423 = vmatpush.bf16.msra.mxu2 %v2474_v10  ;;  %v2918_v54 = vor.u32 %v3458_v45, %v2917_v44  ;;  %v3422_v58 = vld [vmem:[#allocation5 + $0x42c] sm:$0xf0]  ;;  %v2901_v59 = vld [vmem:[#allocation5 + $0x520] sm:$0xf]  ;;  %v2247_v13 = vld [vmem:[#allocation5 + $0x10] sm:$0xf0] }
  0x47   :  { %1411 = vmatpush.bf16.msrb.mxu3 %v2330_v15  ;;  %v3454_v61 = vld [vmem:[#allocation5 + $0x52c] sm:$0xf0]  ;;  %v2774_v2 = vor.u32 %v3422_v58, %v2773_v56  ;;  %v2757_v4 = vld [vmem:[#allocation5 + $0x400] sm:$0xf]  ;;  %v3380_v14 = vld [vmem:[#allocation5 + $0x2e4] sm:$0xf]  ;;  %v2250_v25 = vor.u32 %v3288_v12, %v2247_v13  ;;  %v3821_v34 = vpack.c.b16 %v318_v18, %v318_v18 }
  0x48   :  { %1373 = vmatpush.bf16.msrb.mxu0 %v2822_v24  ;;  %v2902_v6 = vor.u32 %v3454_v61, %v2901_v59  ;;  %v3418_v8 = vld [vmem:[#allocation5 + $0x40c] sm:$0xf0]  ;;  %v2885_v10 = vld [vmem:[#allocation5 + $0x500] sm:$0xf]  ;;  %v2615_v15 = vld [vmem:[#allocation5 + $0x2f0] sm:$0xf0] }
  0x49   :  { %1386 = vmatpush.bf16.msrb.mxu1 %v2950_v27  ;;  %v3450_v11 = vld [vmem:[#allocation5 + $0x50c] sm:$0xf0]  ;;  %v3412_v16 = vld [vmem:[#allocation5 + $0x3e4] sm:$0xf]  ;;  %v2743_v17 = vld [vmem:[#allocation5 + $0x3f0] sm:$0xf0]  ;;  %v2758_v20 = vor.u32 %v3418_v8, %v2757_v4 }
  0x4a   :  { %1424 = vmatpush.bf16.msra.mxu2 %v2458_v23  ;;  %v3444_v21 = vld [vmem:[#allocation5 + $0x4e4] sm:$0xf]  ;;  %v2871_v22 = vld [vmem:[#allocation5 + $0x4f0] sm:$0xf0]  ;;  %v319_v23 = vunpack.c.h.b16 %v102_v5  ;;  %v2886_v24 = vor.u32 %v3450_v11, %v2885_v10  ;;  %v2746_v29 = vor.u32 %v3412_v16, %v2743_v17 }
  0x4b   :  { %1412 = vmatpush.bf16.msrb.mxu3 %v2314_v28  ;;  %v3320_v26 = vld [vmem:[#allocation5 + $0x104] sm:$0xf]  ;;  %v2375_v27 = vld [vmem:[#allocation5 + $0x110] sm:$0xf0]  ;;  %v2618_v28 = vor.u32 %v3380_v14, %v2615_v15  ;;  %v2874_v33 = vor.u32 %v3444_v21, %v2871_v22 }
  0x4c   :  { %1374 = vmatpush.bf16.msrb.mxu0 %v2806_v37  ;;  %3027 = vmatmul.msk.bf16.vlgmr.msrb.gmra.mxu2 %vm1314_vm0, %v3817_v48  ;;  %v3476_v30 = vld [vmem:[#allocation5 + $0x5e4] sm:$0xf]  ;;  %v2999_v31 = vld [vmem:[#allocation5 + $0x5f0] sm:$0xf0]  ;;  %v2378_v38 = vor.u32 %v3320_v26, %v2375_v27  ;;  %v3823_v39 = vpack.c.b16 %v319_v23, %v319_v23 }
  0x4d   :  { %1387 = vmatpush.bf16.msrb.mxu1 %v2934_v40  ;;  %v3376_v32 = vld [vmem:[#allocation5 + $0x2c4] sm:$0xf]  ;;  %v2599_v35 = vld [vmem:[#allocation5 + $0x2d0] sm:$0xf0]  ;;  %v3002_v42 = vor.u32 %v3476_v30, %v2999_v31 }
  0x4e   :  { %1425 = vmatpush.bf16.msra.mxu2 %v2442_v36  ;;  %v3408_v36 = vld [vmem:[#allocation5 + $0x3c4] sm:$0xf]  ;;  %v2727_v37 = vld [vmem:[#allocation5 + $0x3d0] sm:$0xf0]  ;;  %v2602_v43 = vor.u32 %v3376_v32, %v2599_v35 }
  0x4f   :  { %1413 = vmatpush.bf16.msrb.mxu3 %v2298_v41  ;;  %v3440_v40 = vld [vmem:[#allocation5 + $0x4c4] sm:$0xf]  ;;  %v2855_v41 = vld [vmem:[#allocation5 + $0x4d0] sm:$0xf0]  ;;  %v2730_v44 = vor.u32 %v3408_v36, %v2727_v37 }
  0x50   :  { %1375 = vmatpush.bf16.msrb.mxu0 %v2790_v50  ;;  %v3472_v45 = vld [vmem:[#allocation5 + $0x5c4] sm:$0xf]  ;;  %v2983_v46 = vld [vmem:[#allocation5 + $0x5d0] sm:$0xf0] }
  0x51   :  { %1388 = vmatpush.bf16.msrb.mxu1 %v2918_v54  ;;  %v3372_v47 = vld [vmem:[#allocation5 + $0x2a4] sm:$0xf]  ;;  %v2583_v50 = vld [vmem:[#allocation5 + $0x2b0] sm:$0xf0]  ;;  %v2986_v56 = vor.u32 %v3472_v45, %v2983_v46 }
  0x52   :  { %1426 = vmatpush.bf16.msra.mxu2 %v2426_v49  ;;  %v2858_v49 = vor.u32 %v3440_v40, %v2855_v41  ;;  %v3404_v51 = vld [vmem:[#allocation5 + $0x3a4] sm:$0xf]  ;;  %v2711_v52 = vld [vmem:[#allocation5 + $0x3b0] sm:$0xf0]  ;;  %v2586_v58 = vor.u32 %v3372_v47, %v2583_v50 }
  0x53   :  { %1414 = vmatpush.bf16.msrb.mxu3 %v2282_v55  ;;  %v3436_v54 = vld [vmem:[#allocation5 + $0x4a4] sm:$0xf]  ;;  %v2839_v55 = vld [vmem:[#allocation5 + $0x4b0] sm:$0xf0]  ;;  %v2714_v59 = vor.u32 %v3404_v51, %v2711_v52 }
  0x54   :  { %1376 = vmatpush.bf16.msrb.mxu0 %v2774_v2  ;;  %v3468_v61 = vld [vmem:[#allocation5 + $0x5a4] sm:$0xf]  ;;  %v2967_v62 = vld [vmem:[#allocation5 + $0x5b0] sm:$0xf0]  ;;  %v2842_v0 = vor.u32 %v3436_v54, %v2839_v55 }
  0x55   :  { %1389 = vmatpush.bf16.msrb.mxu1 %v2902_v6  ;;  %v3368_v63 = vld [vmem:[#allocation5 + $0x284] sm:$0xf]  ;;  %v2695_v3 = vld [vmem:[#allocation5 + $0x390] sm:$0xf0]  ;;  %v2970_v6 = vor.u32 %v3468_v61, %v2967_v62  ;;  %v2365_v61 = vld [vmem:[#allocation5 + $0xe8] sm:$0xf] }
  0x56   :  { %1427 = vmatpush.bf16.msra.mxu2 %v2410_v1  ;;  %v2567_v1 = vld [vmem:[#allocation5 + $0x290] sm:$0xf0]  ;;  %v3400_v2 = vld [vmem:[#allocation5 + $0x384] sm:$0xf]  ;;  %v3319_v62 = vld [vmem:[#allocation5 + $0xf4] sm:$0xf0] }
  0x57   :  { %1415 = vmatpush.bf16.msrb.mxu3 %v2266_v7  ;;  %v3432_v4 = vld [vmem:[#allocation5 + $0x484] sm:$0xf]  ;;  %v2823_v5 = vld [vmem:[#allocation5 + $0x490] sm:$0xf0]  ;;  %v2570_v7 = vor.u32 %v3368_v63, %v2567_v1  ;;  %v2698_v8 = vor.u32 %v3400_v2, %v2695_v3  ;;  %v2621_v2 = vld [vmem:[#allocation5 + $0x2e8] sm:$0xf] }
  0x58   :  { %1377 = vmatpush.bf16.msrb.mxu0 %v2758_v20  ;;  %v3464_v10 = vld [vmem:[#allocation5 + $0x584] sm:$0xf]  ;;  %v2951_v11 = vld [vmem:[#allocation5 + $0x590] sm:$0xf0]  ;;  %v2826_v13 = vor.u32 %v3432_v4, %v2823_v5  ;;  %v3383_v3 = vld [vmem:[#allocation5 + $0x2f4] sm:$0xf0] }
  0x59   :  { %1390 = vmatpush.bf16.msrb.mxu1 %v2886_v24  ;;  %v3364_v12 = vld [vmem:[#allocation5 + $0x264] sm:$0xf]  ;;  %v2551_v14 = vld [vmem:[#allocation5 + $0x270] sm:$0xf0] }
  0x5a   :  { %1428 = vmatpush.bf16.msra.mxu2 %v2394_v19  ;;  %v3396_v15 = vld [vmem:[#allocation5 + $0x364] sm:$0xf]  ;;  %v2679_v16 = vld [vmem:[#allocation5 + $0x370] sm:$0xf0]  ;;  %v2954_v19 = vor.u32 %v3464_v10, %v2951_v11  ;;  %v2554_v20 = vor.u32 %v3364_v12, %v2551_v14  ;;  %v2366_v10 = vor.u32 %v3319_v62, %v2365_v61  ;;  %v2749_v11 = vld [vmem:[#allocation5 + $0x3e8] sm:$0xf] }
  0x5b   :  { %1416 = vmatpush.bf16.msrb.mxu3 %v2250_v25  ;;  %1378 = vmatmul.bf16.vlgmr.msrb.gmra.mxu0 %v3821_v34  ;;  %v3428_v17 = vld [vmem:[#allocation5 + $0x464] sm:$0xf]  ;;  %v2807_v18 = vld [vmem:[#allocation5 + $0x470] sm:$0xf0]  ;;  %v2682_v21 = vor.u32 %v3396_v15, %v2679_v16  ;;  %v3415_v12 = vld [vmem:[#allocation5 + $0x3f4] sm:$0xf0]  ;;  %v2622_v16 = vor.u32 %v3383_v3, %v2621_v2 }
  0x5c   :  { %1435 = vmatpush.bf16.msra.mxu0 %v2618_v28  ;;  %1391 = vmatmul.bf16.vlgmr.msrb.gmra.mxu1 %v3823_v39  ;;  %v3460_v22 = vld [vmem:[#allocation5 + $0x564] sm:$0xf]  ;;  %v2935_v23 = vld [vmem:[#allocation5 + $0x570] sm:$0xf0]  ;;  %v2810_v25 = vor.u32 %v3428_v17, %v2807_v18  ;;  %v2493_v14 = vld [vmem:[#allocation5 + $0x1e8] sm:$0xf] }
  0x5d   :  { %1448 = vmatpush.bf16.msra.mxu1 %v2746_v29  ;;  %v3360_v24 = vld [vmem:[#allocation5 + $0x244] sm:$0xf]  ;;  %v2535_v26 = vld [vmem:[#allocation5 + $0x250] sm:$0xf0]  ;;  %v2938_v31 = vor.u32 %v3460_v22, %v2935_v23  ;;  %v3351_v15 = vld [vmem:[#allocation5 + $0x1f4] sm:$0xf0] }
  0x5e   :  { %1429 = vmatpush.bf16.msra.mxu2 %v2378_v38  ;;  %1417 = vmatmul.bf16.vlgmr.msrb.gmra.mxu3 %v3807_v57  ;;  %v3392_v27 = vld [vmem:[#allocation5 + $0x344] sm:$0xf]  ;;  %v2663_v28 = vld [vmem:[#allocation5 + $0x350] sm:$0xf0]  ;;  %v2538_v32 = vor.u32 %v3360_v24, %v2535_v26  ;;  %v2349_v18 = vld [vmem:[#allocation5 + $0xc8] sm:$0xf]  ;;  %v2494_v23 = vor.u32 %v3351_v15, %v2493_v14 }
  0x5f   :  { %1461 = vmatpush.bf16.msra.mxu3 %v2874_v33  ;;  %v3424_v29 = vld [vmem:[#allocation5 + $0x444] sm:$0xf]  ;;  %v2791_v30 = vld [vmem:[#allocation5 + $0x450] sm:$0xf0]  ;;  %v2666_v33 = vor.u32 %v3392_v27, %v2663_v28  ;;  %v3379_v22 = vld [vmem:[#allocation5 + $0x2d4] sm:$0xf0] }
  0x60   :  { %1436 = vmatpush.bf16.msra.mxu0 %v2602_v43  ;;  %v3456_v35 = vld [vmem:[#allocation5 + $0x544] sm:$0xf]  ;;  %v2919_v36 = vld [vmem:[#allocation5 + $0x550] sm:$0xf0]  ;;  %v2794_v38 = vor.u32 %v3424_v29, %v2791_v30  ;;  %v2733_v24 = vld [vmem:[#allocation5 + $0x3c8] sm:$0xf] }
  0x61   :  { %1449 = vmatpush.bf16.msra.mxu1 %v2730_v44  ;;  %1430 = vmatmul.bf16.vlgmr.msra.gmra.mxu2 %v3813_v9  ;;  %v3356_v37 = vld [vmem:[#allocation5 + $0x224] sm:$0xf]  ;;  %v2519_v40 = vld [vmem:[#allocation5 + $0x230] sm:$0xf0]  ;;  %v2922_v45 = vor.u32 %v3456_v35, %v2919_v36  ;;  %v2477_v27 = vld [vmem:[#allocation5 + $0x1c8] sm:$0xf] }
  0x62   :  { %1474 = vmatpush.bf16.msrb.mxu2 %v3002_v42  ;;  %v3388_v41 = vld [vmem:[#allocation5 + $0x324] sm:$0xf]  ;;  %v2647_v42 = vld [vmem:[#allocation5 + $0x330] sm:$0xf0]  ;;  %v3347_v28 = vld [vmem:[#allocation5 + $0x1d4] sm:$0xf0] }
  0x63   :  { %1462 = vmatpush.bf16.msra.mxu3 %v2858_v49  ;;  %v3420_v43 = vld [vmem:[#allocation5 + $0x424] sm:$0xf]  ;;  %v2775_v44 = vld [vmem:[#allocation5 + $0x430] sm:$0xf0]  ;;  %v2522_v49 = vor.u32 %v3356_v37, %v2519_v40  ;;  %v2650_v50 = vor.u32 %v3388_v41, %v2647_v42  ;;  %v2333_v30 = vld [vmem:[#allocation5 + $0xa8] sm:$0xf]  ;;  %v2478_v36 = vor.u32 %v3347_v28, %v2477_v27 }
  0x64   :  { %1437 = vmatpush.bf16.msra.mxu0 %v2586_v58  ;;  %v3452_v46 = vld [vmem:[#allocation5 + $0x524] sm:$0xf]  ;;  %v2903_v47 = vld [vmem:[#allocation5 + $0x530] sm:$0xf0]  ;;  %v2778_v55 = vor.u32 %v3420_v43, %v2775_v44  ;;  %v3375_v35 = vld [vmem:[#allocation5 + $0x2b4] sm:$0xf0] }
  0x65   :  { %1450 = vmatpush.bf16.msra.mxu1 %v2714_v59  ;;  %v3352_v51 = vld [vmem:[#allocation5 + $0x204] sm:$0xf]  ;;  %v2503_v52 = vld [vmem:[#allocation5 + $0x210] sm:$0xf0]  ;;  %v2717_v37 = vld [vmem:[#allocation5 + $0x3a8] sm:$0xf] }
  0x66   :  { %1475 = vmatpush.bf16.msrb.mxu2 %v2986_v56  ;;  %v3384_v54 = vld [vmem:[#allocation5 + $0x304] sm:$0xf]  ;;  %v2631_v56 = vld [vmem:[#allocation5 + $0x310] sm:$0xf0]  ;;  %v2506_v4 = vor.u32 %v3352_v51, %v2503_v52  ;;  %v2461_v41 = vld [vmem:[#allocation5 + $0x1a8] sm:$0xf] }
  0x67   :  { %1463 = vmatpush.bf16.msra.mxu3 %v2842_v0  ;;  %v3416_v58 = vld [vmem:[#allocation5 + $0x404] sm:$0xf]  ;;  %v2759_v59 = vld [vmem:[#allocation5 + $0x410] sm:$0xf0]  ;;  %v2906_v0 = vor.u32 %v3452_v46, %v2903_v47  ;;  %v2634_v5 = vor.u32 %v3384_v54, %v2631_v56  ;;  %v3343_v42 = vld [vmem:[#allocation5 + $0x1b4] sm:$0xf0] }
  0x68   :  { %1438 = vmatpush.bf16.msra.mxu0 %v2570_v7  ;;  %v3480_v63 = vld [vmem:[#allocation5 + $0x604] sm:$0xf]  ;;  %v3015_v1 = vld [vmem:[#allocation5 + $0x610] sm:$0xf0]  ;;  %v2317_v44 = vld [vmem:[#allocation5 + $0x88] sm:$0xf] }
  0x69   :  { %1451 = vmatpush.bf16.msra.mxu1 %v2698_v8  ;;  %v2887_v7 = vld [vmem:[#allocation5 + $0x510] sm:$0xf0]  ;;  %v2762_v8 = vor.u32 %v3416_v58, %v2759_v59  ;;  %v2573_v47 = vld [vmem:[#allocation5 + $0x288] sm:$0xf]  ;;  %v3403_v52 = vld [vmem:[#allocation5 + $0x394] sm:$0xf0] }
  0x6a   :  { %1476 = vmatpush.bf16.msrb.mxu2 %v2970_v6  ;;  %v3448_v6 = vld [vmem:[#allocation5 + $0x504] sm:$0xf]  ;;  %v2701_v51 = vld [vmem:[#allocation5 + $0x388] sm:$0xf]  ;;  %v3339_v56 = vld [vmem:[#allocation5 + $0x194] sm:$0xf0] }
  0x6b   :  { %1464 = vmatpush.bf16.msra.mxu3 %v2826_v13  ;;  %v3018_v13 = vor.u32 %v3480_v63, %v3015_v1  ;;  %v2890_v17 = vor.u32 %v3448_v6, %v2887_v7  ;;  %v2301_v59 = vld [vmem:[#allocation5 + $0x68] sm:$0xf]  ;;  %v3303_v61 = vld [vmem:[#allocation5 + $0x74] sm:$0xf0]  ;;  %v2702_v62 = vor.u32 %v3403_v52, %v2701_v51  ;;  %v3317_v51 = vld [vmem:[#allocation5 + $0xec] sm:$0xf] }
  0x6c   :  { %1439 = vmatpush.bf16.msra.mxu0 %v2554_v20  ;;  %v2750_v20 = vor.u32 %v3415_v12, %v2749_v11  ;;  %v2557_v63 = vld [vmem:[#allocation5 + $0x268] sm:$0xf]  ;;  %v3399_v3 = vld [vmem:[#allocation5 + $0x374] sm:$0xf0]  ;;  %v2367_v52 = vld [vmem:[#allocation5 + $0xf8] sm:$0xf0] }
  0x6d   :  { %1452 = vmatpush.bf16.msra.mxu1 %v2682_v21  ;;  %v2605_v21 = vld [vmem:[#allocation5 + $0x2c8] sm:$0xf]  ;;  %v3335_v6 = vld [vmem:[#allocation5 + $0x174] sm:$0xf0] }
  0x6e   :  { %1477 = vmatpush.bf16.msrb.mxu2 %v2954_v19  ;;  %v3315_v19 = vld [vmem:[#allocation5 + $0xd4] sm:$0xf0]  ;;  %v2606_v29 = vor.u32 %v3379_v22, %v2605_v21  ;;  %v2685_v2 = vld [vmem:[#allocation5 + $0x368] sm:$0xf] }
  0x6f   :  { %1465 = vmatpush.bf16.msra.mxu3 %v2810_v25  ;;  %v3411_v25 = vld [vmem:[#allocation5 + $0x3d4] sm:$0xf0]  ;;  %v2350_v26 = vor.u32 %v3315_v19, %v2349_v18  ;;  %v2686_v11 = vor.u32 %v3399_v3, %v2685_v2  ;;  %v2541_v12 = vld [vmem:[#allocation5 + $0x248] sm:$0xf]  ;;  %v2370_v3 = vor.u32 %v3317_v51, %v2367_v52 }
  0x70   :  { %1440 = vmatpush.bf16.msra.mxu0 %v2538_v32  ;;  %v2734_v32 = vor.u32 %v3411_v25, %v2733_v24  ;;  %v2669_v15 = vld [vmem:[#allocation5 + $0x348] sm:$0xf]  ;;  %v3331_v19 = vld [vmem:[#allocation5 + $0x154] sm:$0xf0] }
  0x71   :  { %1453 = vmatpush.bf16.msra.mxu1 %v2666_v33  ;;  %v2589_v33 = vld [vmem:[#allocation5 + $0x2a8] sm:$0xf]  ;;  %v3295_v22 = vld [vmem:[#allocation5 + $0x34] sm:$0xf0] }
  0x72   :  { %1478 = vmatpush.bf16.msrb.mxu2 %v2938_v31  ;;  %v3311_v31 = vld [vmem:[#allocation5 + $0xb4] sm:$0xf0]  ;;  %v2590_v43 = vor.u32 %v3375_v35, %v2589_v33  ;;  %v2413_v18 = vld [vmem:[#allocation5 + $0x148] sm:$0xf] }
  0x73   :  { %1466 = vmatpush.bf16.msra.mxu3 %v2794_v38  ;;  %v3407_v38 = vld [vmem:[#allocation5 + $0x3b4] sm:$0xf0]  ;;  %v2334_v40 = vor.u32 %v3311_v31, %v2333_v30  ;;  %v2269_v21 = vld [vmem:[#allocation5 + $0x28] sm:$0xf] }
  0x74   :  { %1441 = vmatpush.bf16.msra.mxu0 %v2522_v49  ;;  %v2718_v46 = vor.u32 %v3407_v38, %v2717_v37  ;;  %v3371_v49 = vld [vmem:[#allocation5 + $0x294] sm:$0xf0]  ;;  %v2525_v24 = vld [vmem:[#allocation5 + $0x228] sm:$0xf] }
  0x75   :  { %1454 = vmatpush.bf16.msra.mxu1 %v2650_v50  ;;  %v2462_v50 = vor.u32 %v3343_v42, %v2461_v41  ;;  %v2574_v58 = vor.u32 %v3371_v49, %v2573_v47  ;;  %v3359_v25 = vld [vmem:[#allocation5 + $0x234] sm:$0xf0]  ;;  %v2653_v27 = vld [vmem:[#allocation5 + $0x328] sm:$0xf] }
  0x76   :  { %1479 = vmatpush.bf16.msrb.mxu2 %v2922_v45  ;;  %v3307_v45 = vld [vmem:[#allocation5 + $0x94] sm:$0xf0]  ;;  %v2397_v30 = vld [vmem:[#allocation5 + $0x128] sm:$0xf]  ;;  %v2526_v33 = vor.u32 %v3359_v25, %v2525_v24 }
  0x77   :  { %1467 = vmatpush.bf16.msra.mxu3 %v2778_v55  ;;  %v2318_v54 = vor.u32 %v3307_v45, %v2317_v44  ;;  %v2445_v55 = vld [vmem:[#allocation5 + $0x188] sm:$0xf]  ;;  %v3391_v28 = vld [vmem:[#allocation5 + $0x334] sm:$0xf0] }
  0x78   :  { %1442 = vmatpush.bf16.msra.mxu0 %v2506_v4  ;;  %v2446_v1 = vor.u32 %v3339_v56, %v2445_v55  ;;  %v2302_v4 = vor.u32 %v3303_v61, %v2301_v59  ;;  %v3327_v31 = vld [vmem:[#allocation5 + $0x134] sm:$0xf0]  ;;  %v2654_v38 = vor.u32 %v3391_v28, %v2653_v27  ;;  %v2509_v41 = vld [vmem:[#allocation5 + $0x208] sm:$0xf]  ;;  %v2463_v27 = vld [vmem:[#allocation5 + $0x1b8] sm:$0xf0] }
  0x79   :  { %1455 = vmatpush.bf16.msra.mxu1 %v2634_v5  ;;  %v2429_v5 = vld [vmem:[#allocation5 + $0x168] sm:$0xf]  ;;  %v3291_v35 = vld [vmem:[#allocation5 + $0x14] sm:$0xf0]  ;;  %v2398_v44 = vor.u32 %v3327_v31, %v2397_v30  ;;  %v3305_v30 = vld [vmem:[#allocation5 + $0x8c] sm:$0xf] }
  0x7a   :  { %1480 = vmatpush.bf16.msrb.mxu2 %v2906_v0  ;;  %v3367_v0 = vld [vmem:[#allocation5 + $0x274] sm:$0xf0]  ;;  %v2430_v14 = vor.u32 %v3335_v6, %v2429_v5  ;;  %v3005_v56 = vld [vmem:[#allocation5 + $0x5e8] sm:$0xf]  ;;  %v3313_v5 = vld [vmem:[#allocation5 + $0xcc] sm:$0xf] }
  0x7b   :  { %1468 = vmatpush.bf16.msra.mxu3 %v2762_v8  ;;  %1443 = vmatmul.bf16.vlgmr.msra.gmra.mxu0 %v3805_v53  ;;  %v2558_v7 = vor.u32 %v3367_v0, %v2557_v63  ;;  %v2285_v8 = vld [vmem:[#allocation5 + $0x48] sm:$0xf]  ;;  %v3447_v37 = vld [vmem:[#allocation5 + $0x4f4] sm:$0xf0]  ;;  %v3349_v0 = vld [vmem:[#allocation5 + $0x1ec] sm:$0xf] }
  0x7c   :  { %1526 = vmatpush.bf16.msrb.mxu0 %v2622_v16  ;;  %1456 = vmatmul.bf16.vlgmr.msra.gmra.mxu1 %v3809_v60  ;;  %v3395_v16 = vld [vmem:[#allocation5 + $0x354] sm:$0xf0]  ;;  %v2861_v59 = vld [vmem:[#allocation5 + $0x4c8] sm:$0xf]  ;;  %v2351_v6 = vld [vmem:[#allocation5 + $0xd8] sm:$0xf0] }
  0x7d   :  { %1500 = vmatpush.bf16.msrb.mxu1 %v2366_v10  ;;  %v3299_v10 = vld [vmem:[#allocation5 + $0x54] sm:$0xf0]  ;;  %v2829_v24 = vld [vmem:[#allocation5 + $0x488] sm:$0xf]  ;;  %v2319_v31 = vld [vmem:[#allocation5 + $0x98] sm:$0xf0] }
  0x7e   :  { %1481 = vmatpush.bf16.msrb.mxu2 %v2890_v17  ;;  %1469 = vmatmul.bf16.vlgmr.msra.gmra.mxu3 %v3821_v34  ;;  %v2286_v17 = vor.u32 %v3299_v10, %v2285_v8  ;;  %v3355_v42 = vld [vmem:[#allocation5 + $0x214] sm:$0xf0]  ;;  %v2989_v10 = vld [vmem:[#allocation5 + $0x5c8] sm:$0xf] }
  0x7f   :  { %1494 = vmatpush.bf16.msrb.mxu3 %v3018_v13  ;;  %v3363_v13 = vld [vmem:[#allocation5 + $0x254] sm:$0xf0]  ;;  %v2510_v55 = vor.u32 %v3355_v42, %v2509_v41  ;;  %v2447_v41 = vld [vmem:[#allocation5 + $0x198] sm:$0xf0]  ;;  %v2322_v42 = vor.u32 %v3305_v30, %v2319_v31  ;;  %v2797_v51 = vld [vmem:[#allocation5 + $0x448] sm:$0xf] }
  0x80   :  { %1527 = vmatpush.bf16.msrb.mxu0 %v2606_v29  ;;  %v2270_v29 = vor.u32 %v3295_v22, %v2269_v21  ;;  %v3387_v45 = vld [vmem:[#allocation5 + $0x314] sm:$0xf0]  ;;  %v2973_v22 = vld [vmem:[#allocation5 + $0x5a8] sm:$0xf]  ;;  %v2751_v30 = vld [vmem:[#allocation5 + $0x3f8] sm:$0xf0] }
  0x81   :  { %1501 = vmatpush.bf16.msrb.mxu1 %v2350_v26  ;;  %1482 = vmatmul.bf16.vlgmr.msrb.gmra.mxu2 %v3823_v39  ;;  %v2414_v26 = vor.u32 %v3331_v19, %v2413_v18  ;;  %v3483_v47 = vld [vmem:[#allocation5 + $0x614] sm:$0xf0]  ;;  %v3309_v18 = vld [vmem:[#allocation5 + $0xac] sm:$0xf]  ;;  %v2335_v19 = vld [vmem:[#allocation5 + $0xb8] sm:$0xf0] }
  0x82   :  { %1539 = vmatpush.bf16.msra.mxu2 %v2750_v20  ;;  %v2542_v20 = vor.u32 %v3363_v13, %v2541_v12  ;;  %v2845_v12 = vld [vmem:[#allocation5 + $0x4a8] sm:$0xf]  ;;  %v3439_v13 = vld [vmem:[#allocation5 + $0x4b4] sm:$0xf0]  ;;  %v2338_v28 = vor.u32 %v3309_v18, %v2335_v19  ;;  %v2399_v18 = vld [vmem:[#allocation5 + $0x138] sm:$0xf0] }
  0x83   :  { %1513 = vmatpush.bf16.msra.mxu3 %v2494_v23  ;;  %v2670_v23 = vor.u32 %v3395_v16, %v2669_v15  ;;  %v2479_v15 = vld [vmem:[#allocation5 + $0x1d8] sm:$0xf0]  ;;  %v2354_v16 = vor.u32 %v3313_v5, %v2351_v6  ;;  %v3435_v25 = vld [vmem:[#allocation5 + $0x494] sm:$0xf0] }
  0x84   :  { %1528 = vmatpush.bf16.msrb.mxu0 %v2590_v43  ;;  %v2637_v43 = vld [vmem:[#allocation5 + $0x308] sm:$0xf]  ;;  %v3427_v52 = vld [vmem:[#allocation5 + $0x454] sm:$0xf0]  ;;  %v2415_v5 = vld [vmem:[#allocation5 + $0x158] sm:$0xf0] }
  0x85   :  { %1502 = vmatpush.bf16.msrb.mxu1 %v2334_v40  ;;  %v2381_v40 = vld [vmem:[#allocation5 + $0x108] sm:$0xf]  ;;  %v2638_v61 = vor.u32 %v3387_v45, %v2637_v43  ;;  %v2303_v45 = vld [vmem:[#allocation5 + $0x78] sm:$0xf0] }
  0x86   :  { %1540 = vmatpush.bf16.msra.mxu2 %v2734_v32  ;;  %v2253_v32 = vld [vmem:[#allocation5 + $0x8] sm:$0xf] }
  0x87   :  { %1514 = vmatpush.bf16.msra.mxu3 %v2478_v36  ;;  %v2877_v36 = vld [vmem:[#allocation5 + $0x4e8] sm:$0xf]  ;;  %v2254_v49 = vor.u32 %v3291_v35, %v2253_v32  ;;  %v2830_v32 = vor.u32 %v3435_v25, %v2829_v24  ;;  %v3289_v24 = vld [vmem:[#allocation5 + $0xc] sm:$0xf]  ;;  %v2255_v25 = vld [vmem:[#allocation5 + $0x18] sm:$0xf0] }
  0x88   :  { %1529 = vmatpush.bf16.msrb.mxu0 %v2574_v58  ;;  %v3479_v58 = vld [vmem:[#allocation5 + $0x5f4] sm:$0xf0]  ;;  %v2957_v35 = vld [vmem:[#allocation5 + $0x588] sm:$0xf] }
  0x89   :  { %1503 = vmatpush.bf16.msrb.mxu1 %v2318_v54  ;;  %v2878_v54 = vor.u32 %v3447_v37, %v2877_v36  ;;  %v3467_v36 = vld [vmem:[#allocation5 + $0x594] sm:$0xf0]  ;;  %v2813_v37 = vld [vmem:[#allocation5 + $0x468] sm:$0xf] }
  0x8a   :  { %1541 = vmatpush.bf16.msra.mxu2 %v2718_v46  ;;  %v3021_v46 = vld [vmem:[#allocation5 + $0x608] sm:$0xf]  ;;  %v2958_v43 = vor.u32 %v3467_v36, %v2957_v35  ;;  %v3377_v35 = vld [vmem:[#allocation5 + $0x2cc] sm:$0xf]  ;;  %v2258_v36 = vor.u32 %v3289_v24, %v2255_v25 }
  0x8b   :  { %1515 = vmatpush.bf16.msra.mxu3 %v2462_v50  ;;  %v3323_v50 = vld [vmem:[#allocation5 + $0x114] sm:$0xf0]  ;;  %v3022_v63 = vor.u32 %v3483_v47, %v3021_v46  ;;  %v3397_v24 = vld [vmem:[#allocation5 + $0x36c] sm:$0xf] }
  0x8c   :  { %1530 = vmatpush.bf16.msrb.mxu0 %v2558_v7  ;;  %v2382_v2 = vor.u32 %v3323_v50, %v2381_v40  ;;  %v3337_v40 = vld [vmem:[#allocation5 + $0x18c] sm:$0xf]  ;;  %v3463_v50 = vld [vmem:[#allocation5 + $0x574] sm:$0xf0] }
  0x8d   :  { %1504 = vmatpush.bf16.msrb.mxu1 %v2302_v4  ;;  %v3006_v4 = vor.u32 %v3479_v58, %v3005_v56  ;;  %v2450_v47 = vor.u32 %v3337_v40, %v2447_v41  ;;  %v2383_v40 = vld [vmem:[#allocation5 + $0x118] sm:$0xf0] }
  0x8e   :  { %1542 = vmatpush.bf16.msra.mxu2 %v2702_v62  ;;  %3028 = vmatmul.msk.bf16.vlgmr.msrb.gmra.mxu3 %vm1314_vm0, %v3817_v48  ;;  %v3443_v62 = vld [vmem:[#allocation5 + $0x4d4] sm:$0xf0] }
  0x8f   :  { %1516 = vmatpush.bf16.msra.mxu3 %v2446_v1  ;;  %v2495_v1 = vld [vmem:[#allocation5 + $0x1f8] sm:$0xf0]  ;;  %v2862_v7 = vor.u32 %v3443_v62, %v2861_v59  ;;  %v3297_v59 = vld [vmem:[#allocation5 + $0x4c] sm:$0xf]  ;;  %v2798_v62 = vor.u32 %v3427_v52, %v2797_v51 }
  0x90   :  { %1531 = vmatpush.bf16.msrb.mxu0 %v2542_v20  ;;  %v2498_v8 = vor.u32 %v3349_v0, %v2495_v1  ;;  %v2846_v20 = vor.u32 %v3439_v13, %v2845_v12  ;;  %v2925_v0 = vld [vmem:[#allocation5 + $0x548] sm:$0xf]  ;;  %v3459_v1 = vld [vmem:[#allocation5 + $0x554] sm:$0xf0]  ;;  %v3441_v51 = vld [vmem:[#allocation5 + $0x4cc] sm:$0xf] }
  0x91   :  { %1505 = vmatpush.bf16.msrb.mxu1 %v2286_v17  ;;  %v2909_v13 = vld [vmem:[#allocation5 + $0x528] sm:$0xf]  ;;  %v2863_v52 = vld [vmem:[#allocation5 + $0x4d8] sm:$0xf0] }
  0x92   :  { %1543 = vmatpush.bf16.msra.mxu2 %v2686_v11  ;;  %v3475_v11 = vld [vmem:[#allocation5 + $0x5d4] sm:$0xf0] }
  0x93   :  { %1517 = vmatpush.bf16.msra.mxu3 %v2430_v14  ;;  %v3345_v14 = vld [vmem:[#allocation5 + $0x1cc] sm:$0xf]  ;;  %v2990_v17 = vor.u32 %v3475_v11, %v2989_v10  ;;  %v2271_v10 = vld [vmem:[#allocation5 + $0x38] sm:$0xf0] }
  0x94   :  { %1532 = vmatpush.bf16.msrb.mxu0 %v2526_v33  ;;  %v2482_v21 = vor.u32 %v3345_v14, %v2479_v15  ;;  %v3455_v14 = vld [vmem:[#allocation5 + $0x534] sm:$0xf0]  ;;  %v2765_v15 = vld [vmem:[#allocation5 + $0x408] sm:$0xf] }
  0x95   :  { %1506 = vmatpush.bf16.msrb.mxu1 %v2270_v29 }
  0x96   :  { %1544 = vmatpush.bf16.msra.mxu2 %v2670_v23  ;;  %v3471_v23 = vld [vmem:[#allocation5 + $0x5b4] sm:$0xf0] }
  0x97   :  { %1518 = vmatpush.bf16.msra.mxu3 %v2414_v26  ;;  %v3341_v26 = vld [vmem:[#allocation5 + $0x1ac] sm:$0xf]  ;;  %v2974_v29 = vor.u32 %v3471_v23, %v2973_v22  ;;  %v2910_v22 = vor.u32 %v3455_v14, %v2909_v13  ;;  %v2893_v23 = vld [vmem:[#allocation5 + $0x508] sm:$0xf]  ;;  %v2703_v14 = vld [vmem:[#allocation5 + $0x398] sm:$0xf0] }
  0x98   :  { %1533 = vmatpush.bf16.msrb.mxu0 %v2510_v55  ;;  %v2466_v33 = vor.u32 %v3341_v26, %v2463_v27  ;;  %v2431_v55 = vld [vmem:[#allocation5 + $0x178] sm:$0xf0] }
  0x99   :  { %1507 = vmatpush.bf16.msrb.mxu1 %v2254_v49  ;;  %v2941_v49 = vld [vmem:[#allocation5 + $0x568] sm:$0xf] }
  0x9a   :  { %1545 = vmatpush.bf16.msra.mxu2 %v2654_v38  ;;  %v3431_v38 = vld [vmem:[#allocation5 + $0x474] sm:$0xf0]  ;;  %v2942_v58 = vor.u32 %v3463_v50, %v2941_v49  ;;  %v2735_v50 = vld [vmem:[#allocation5 + $0x3d8] sm:$0xf0] }
  0x9b   :  { %1519 = vmatpush.bf16.msra.mxu3 %v2398_v44  ;;  %1534 = vmatmul.bf16.vlgmr.msrb.gmra.mxu0 %v3805_v53  ;;  %v3301_v44 = vld [vmem:[#allocation5 + $0x6c] sm:$0xf]  ;;  %v2814_v46 = vor.u32 %v3431_v38, %v2813_v37  ;;  %v2607_v37 = vld [vmem:[#allocation5 + $0x2d8] sm:$0xf0] }
  0x9c   :  { %1585 = vmatpush.bf16.msra.mxu0 %v3022_v63  ;;  %1508 = vmatmul.bf16.vlgmr.msrb.gmra.mxu1 %v3807_v57  ;;  %v2306_v56 = vor.u32 %v3301_v44, %v2303_v45  ;;  %v3321_v38 = vld [vmem:[#allocation5 + $0x10c] sm:$0xf] }
  0x9d   :  { %1552 = vmatpush.bf16.msra.mxu1 %v2878_v54  ;;  %v3333_v54 = vld [vmem:[#allocation5 + $0x16c] sm:$0xf]  ;;  %v2386_v49 = vor.u32 %v3321_v38, %v2383_v40 }
  0x9e   :  { %1546 = vmatpush.bf16.msra.mxu2 %v2638_v61  ;;  %v2287_v61 = vld [vmem:[#allocation5 + $0x58] sm:$0xf0]  ;;  %v2434_v63 = vor.u32 %v3333_v54, %v2431_v55  ;;  %v3373_v55 = vld [vmem:[#allocation5 + $0x2ac] sm:$0xf] }
  0x9f   :  { %1520 = vmatpush.bf16.msra.mxu3 %v2382_v2  ;;  %v2781_v2 = vld [vmem:[#allocation5 + $0x428] sm:$0xf]  ;;  %v2290_v6 = vor.u32 %v3297_v59, %v2287_v61  ;;  %v2991_v59 = vld [vmem:[#allocation5 + $0x5d8] sm:$0xf0]  ;;  %v3393_v38 = vld [vmem:[#allocation5 + $0x34c] sm:$0xf] }
  0xa0   :  { %1604 = vmatpush.bf16.msrb.mxu0 %v2498_v8  ;;  %v3293_v8 = vld [vmem:[#allocation5 + $0x2c] sm:$0xf] }
  0xa1   :  { %1553 = vmatpush.bf16.msra.mxu1 %v2862_v7  ;;  %1547 = vmatmul.bf16.vlgmr.msra.gmra.mxu2 %v3809_v60  ;;  %v2926_v7 = vor.u32 %v3459_v1, %v2925_v0  ;;  %v2274_v19 = vor.u32 %v3293_v8, %v2271_v10  ;;  %v2719_v1 = vld [vmem:[#allocation5 + $0x3b8] sm:$0xf0] }
  0xa2   :  { %1591 = vmatpush.bf16.msrb.mxu2 %v2370_v3  ;;  %1521 = vmatmul.bf16.vlgmr.msra.gmra.mxu3 %v3813_v9  ;;  %v3423_v3 = vld [vmem:[#allocation5 + $0x434] sm:$0xf0]  ;;  %v2975_v8 = vld [vmem:[#allocation5 + $0x5b8] sm:$0xf0] }
  0xa3   :  { %1565 = vmatpush.bf16.msrb.mxu3 %v3006_v4  ;;  %v3329_v4 = vld [vmem:[#allocation5 + $0x14c] sm:$0xf]  ;;  %v2782_v11 = vor.u32 %v3423_v3, %v2781_v2  ;;  %v2847_v3 = vld [vmem:[#allocation5 + $0x4b8] sm:$0xf0] }
  0xa4   :  { %1605 = vmatpush.bf16.msrb.mxu0 %v2482_v21  ;;  %v2418_v12 = vor.u32 %v3329_v4, %v2415_v5  ;;  %v2623_v21 = vld [vmem:[#allocation5 + $0x2f8] sm:$0xf0]  ;;  %v3437_v2 = vld [vmem:[#allocation5 + $0x4ac] sm:$0xf] }
  0xa5   :  { %1554 = vmatpush.bf16.msra.mxu1 %v2846_v20  ;;  %v3381_v20 = vld [vmem:[#allocation5 + $0x2ec] sm:$0xf] }
  0xa6   :  { %1592 = vmatpush.bf16.msrb.mxu2 %v2354_v16  ;;  %v3419_v16 = vld [vmem:[#allocation5 + $0x414] sm:$0xf0]  ;;  %v2626_v31 = vor.u32 %v3381_v20, %v2623_v21  ;;  %v3369_v5 = vld [vmem:[#allocation5 + $0x28c] sm:$0xf]  ;;  %v2959_v21 = vld [vmem:[#allocation5 + $0x598] sm:$0xf0] }
  0xa7   :  { %1566 = vmatpush.bf16.msrb.mxu3 %v2990_v17  ;;  %v3325_v17 = vld [vmem:[#allocation5 + $0x12c] sm:$0xf]  ;;  %v2766_v26 = vor.u32 %v3419_v16, %v2765_v15  ;;  %v2831_v16 = vld [vmem:[#allocation5 + $0x498] sm:$0xf0] }
  0xa8   :  { %1606 = vmatpush.bf16.msrb.mxu0 %v2466_v33  ;;  %v2402_v27 = vor.u32 %v3325_v17, %v2399_v18  ;;  %v2879_v33 = vld [vmem:[#allocation5 + $0x4f8] sm:$0xf0]  ;;  %v3433_v15 = vld [vmem:[#allocation5 + $0x48c] sm:$0xf] }
  0xa9   :  { %1555 = vmatpush.bf16.msra.mxu1 %v2830_v32  ;;  %v3445_v32 = vld [vmem:[#allocation5 + $0x4ec] sm:$0xf] }
  0xaa   :  { %1593 = vmatpush.bf16.msrb.mxu2 %v2338_v28  ;;  %v3451_v28 = vld [vmem:[#allocation5 + $0x514] sm:$0xf0]  ;;  %v2882_v45 = vor.u32 %v3445_v32, %v2879_v33  ;;  %v3365_v18 = vld [vmem:[#allocation5 + $0x26c] sm:$0xf]  ;;  %v2943_v33 = vld [vmem:[#allocation5 + $0x578] sm:$0xf0] }
  0xab   :  { %1567 = vmatpush.bf16.msrb.mxu3 %v2974_v29  ;;  %3029 = vmatmul.msk.bf16.vlgmr.msra.gmra.mxu0 %vm1314_vm0, %v3817_v48  ;;  %v3413_v29 = vld [vmem:[#allocation5 + $0x3ec] sm:$0xf]  ;;  %v2894_v41 = vor.u32 %v3451_v28, %v2893_v23  ;;  %v2834_v23 = vor.u32 %v3433_v15, %v2831_v16  ;;  %v2815_v28 = vld [vmem:[#allocation5 + $0x478] sm:$0xf0] }
  0xac   :  { %1607 = vmatpush.bf16.msrb.mxu0 %v2450_v47  ;;  %v2754_v44 = vor.u32 %v3413_v29, %v2751_v30  ;;  %v2610_v47 = vor.u32 %v3377_v35, %v2607_v37  ;;  %v3361_v30 = vld [vmem:[#allocation5 + $0x24c] sm:$0xf]  ;;  %v2767_v15 = vld [vmem:[#allocation5 + $0x418] sm:$0xf0] }
  0xad   :  { %1556 = vmatpush.bf16.msra.mxu1 %v2814_v46  ;;  %v3409_v46 = vld [vmem:[#allocation5 + $0x3cc] sm:$0xf] }
  0xae   :  { %1594 = vmatpush.bf16.msrb.mxu2 %v2322_v42  ;;  %v3477_v42 = vld [vmem:[#allocation5 + $0x5ec] sm:$0xf]  ;;  %v2738_v61 = vor.u32 %v3409_v46, %v2735_v50 }
  0xaf   :  { %1568 = vmatpush.bf16.msrb.mxu3 %v2958_v43  ;;  %v3007_v43 = vld [vmem:[#allocation5 + $0x5f8] sm:$0xf0]  ;;  %v3461_v32 = vld [vmem:[#allocation5 + $0x56c] sm:$0xf] }
  0xb0   :  { %1608 = vmatpush.bf16.msrb.mxu0 %v2434_v63  ;;  %v3010_v54 = vor.u32 %v3477_v42, %v3007_v43  ;;  %v3405_v63 = vld [vmem:[#allocation5 + $0x3ac] sm:$0xf]  ;;  %v2671_v42 = vld [vmem:[#allocation5 + $0x358] sm:$0xf0] }
  0xb1   :  { %1557 = vmatpush.bf16.msra.mxu1 %v2798_v62  ;;  %v2866_v62 = vor.u32 %v3441_v51, %v2863_v52  ;;  %v2722_v10 = vor.u32 %v3405_v63, %v2719_v1  ;;  %v3425_v43 = vld [vmem:[#allocation5 + $0x44c] sm:$0xf]  ;;  %v2927_v51 = vld [vmem:[#allocation5 + $0x558] sm:$0xf0]  ;;  %v2674_v52 = vor.u32 %v3393_v38, %v2671_v42  ;;  %v3073_v42 = vld [vmem:[#allocation8 + $0x50] sm:$0xf] }
  0xb2   :  { %1595 = vmatpush.bf16.msrb.mxu2 %v2306_v56  ;;  %v2591_v56 = vld [vmem:[#allocation5 + $0x2b8] sm:$0xf0]  ;;  %v3357_v46 = vld [vmem:[#allocation5 + $0x22c] sm:$0xf] }
  0xb3   :  { %1569 = vmatpush.bf16.msrb.mxu3 %v2942_v58  ;;  %v3473_v58 = vld [vmem:[#allocation5 + $0x5cc] sm:$0xf]  ;;  %v2594_v0 = vor.u32 %v3373_v55, %v2591_v56 }
  0xb4   :  { %1609 = vmatpush.bf16.msrb.mxu0 %v2418_v12  ;;  %v2994_v4 = vor.u32 %v3473_v58, %v2991_v59  ;;  %v3401_v12 = vld [vmem:[#allocation5 + $0x38c] sm:$0xf]  ;;  %v2655_v58 = vld [vmem:[#allocation5 + $0x338] sm:$0xf0] }
  0xb5   :  { %1558 = vmatpush.bf16.msra.mxu1 %v2782_v11  ;;  %v2850_v11 = vor.u32 %v3437_v2, %v2847_v3  ;;  %v3457_v50 = vld [vmem:[#allocation5 + $0x54c] sm:$0xf]  ;;  %v2911_v3 = vld [vmem:[#allocation5 + $0x538] sm:$0xf0] }
  0xb6   :  { %1596 = vmatpush.bf16.msrb.mxu2 %v2290_v6  ;;  %v2575_v6 = vld [vmem:[#allocation5 + $0x298] sm:$0xf0]  ;;  %v3389_v55 = vld [vmem:[#allocation5 + $0x32c] sm:$0xf] }
  0xb7   :  { %1570 = vmatpush.bf16.msrb.mxu3 %v2926_v7  ;;  %v3469_v7 = vld [vmem:[#allocation5 + $0x5ac] sm:$0xf]  ;;  %v2578_v13 = vor.u32 %v3369_v5, %v2575_v6  ;;  %v3845_v20 = vpop.f32.mrf.mxu0  ;;  %v3023_v5 = vld [vmem:[#allocation5 + $0x618] sm:$0xf0]  ;;  %v3853_v6 = vld [vmem:[#allocation7] sm:$0xf] }
  0xb8   :  { %1610 = vmatpush.bf16.msrb.mxu0 %v2402_v27  ;;  %v2978_v17 = vor.u32 %v3469_v7, %v2975_v8  ;;  %v3429_v27 = vld [vmem:[#allocation5 + $0x46c] sm:$0xf]  ;;  %v3847_v29 = vpop.f32.mrf.mxu1  ;;  %v2658_v8 = vor.u32 %v3389_v55, %v2655_v58 }
  0xb9   :  { %1559 = vmatpush.bf16.msra.mxu1 %v2766_v26  ;;  %v2687_v26 = vld [vmem:[#allocation5 + $0x378] sm:$0xf0]  ;;  %v2818_v37 = vor.u32 %v3429_v27, %v2815_v28  ;;  %v3421_v59 = vld [vmem:[#allocation5 + $0x42c] sm:$0xf] }
  0xba   :  { %1597 = vmatpush.bf16.msrb.mxu2 %v2274_v19  ;;  %v2559_v19 = vld [vmem:[#allocation5 + $0x278] sm:$0xf0]  ;;  %v3353_v63 = vld [vmem:[#allocation5 + $0x20c] sm:$0xf] }
  0xbb   :  { %1571 = vmatpush.bf16.msrb.mxu3 %v2910_v22  ;;  %v2706_v22 = vor.u32 %v3401_v12, %v2703_v14  ;;  %v2562_v25 = vor.u32 %v3365_v18, %v2559_v19  ;;  %v3453_v1 = vld [vmem:[#allocation5 + $0x52c] sm:$0xf]  ;;  %v3089_v19 = vld [vmem:[#allocation8 + $0x70] sm:$0xf] }
  0xbc   :  { %1560 = vmatmul.bf16.vlgmr.msra.gmra.mxu1 %v3821_v34  ;;  %1611 = vmatpush.bf16.msrb.mxu0 %v2386_v49  ;;  %v3417_v14 = vld [vmem:[#allocation5 + $0x40c] sm:$0xf] }
  0xbd   :  { %1617 = vmatpush.bf16.msrb.mxu1 %v2626_v31  ;;  %v2543_v31 = vld [vmem:[#allocation5 + $0x258] sm:$0xf0]  ;;  %v2770_v27 = vor.u32 %v3417_v14, %v2767_v15  ;;  %v3105_v15 = vld [vmem:[#allocation8 + $0x90] sm:$0xf] }
  0xbe   :  { %1598 = vmatpush.bf16.msrb.mxu2 %v2258_v36  ;;  %v2690_v36 = vor.u32 %v3397_v24, %v2687_v26  ;;  %v2546_v40 = vor.u32 %v3361_v30, %v2543_v31  ;;  %v3515_v24 = vld [vmem:[#allocation8 + $0xf4] sm:$0xf0]  ;;  %v3081_v30 = vld [vmem:[#allocation8 + $0x60] sm:$0xf]  ;;  %v3497_v31 = vld [vmem:[#allocation8 + $0x64] sm:$0xf0] }
  0xbf   :  { %1572 = vmatpush.bf16.msrb.mxu3 %v2894_v41  ;;  %1612 = vmatmul.bf16.vlgmr.msrb.gmra.mxu0 %v3813_v9  ;;  %v3849_v35 = vpop.f32.mrf.mxu2  ;;  %v1329_v49 = vpop.f32.mrf.mxu0 }
  0xc0   :  { %1656 = vmatpush.bf16.msra.mxu0 %v3010_v54  ;;  %v1342_v2 = vpop.f32.mrf.mxu1  ;;  %v3493_v49 = vld [vmem:[#allocation8 + $0x44] sm:$0xf0] }
  0xc1   :  { %1618 = vmatpush.bf16.msrb.mxu1 %v2610_v47  ;;  %1599 = vmatmul.bf16.vlgmr.msrb.gmra.mxu2 %v3807_v57  ;;  %v3465_v57 = vld [vmem:[#allocation5 + $0x58c] sm:$0xf]  ;;  %v3851_v41 = vpop.f32.mrf.mxu3  ;;  %v2527_v47 = vld [vmem:[#allocation5 + $0x238] sm:$0xf0] }
  0xc2   :  { %1643 = vmatpush.bf16.msra.mxu2 %v2882_v45  ;;  %1573 = vmatmul.bf16.vlgmr.msrb.gmra.mxu3 %v3823_v39  ;;  %v2962_v9 = vor.u32 %v3465_v57, %v2959_v21  ;;  %v2946_v45 = vor.u32 %v3461_v32, %v2943_v33  ;;  %v2530_v56 = vor.u32 %v3357_v46, %v2527_v47  ;;  %v3499_v57 = vld [vmem:[#allocation8 + $0x74] sm:$0xf0]  ;;  %v3449_v21 = vld [vmem:[#allocation5 + $0x50c] sm:$0xf]  ;;  %v3145_v33 = vld [vmem:[#allocation8 + $0xe0] sm:$0xf] }
  0xc3   :  { %1630 = vmatpush.bf16.msra.mxu3 %v2754_v44  ;;  %v2799_v44 = vld [vmem:[#allocation5 + $0x458] sm:$0xf0]  ;;  %v3090_v28 = vor.u32 %v3499_v57, %v3089_v19  ;;  %v3489_v2 = vld [vmem:[#allocation8 + $0x24] sm:$0xf0]  ;;  %v3033_v19 = vld [vmem:[#allocation8] sm:$0xf] }
  0xc4   :  { %1657 = vmatpush.bf16.msra.mxu0 %v2994_v4  ;;  %v2802_v54 = vor.u32 %v3425_v43, %v2799_v44  ;;  %v3481_v4 = vld [vmem:[#allocation5 + $0x60c] sm:$0xf]  ;;  %v3495_v43 = vld [vmem:[#allocation8 + $0x54] sm:$0xf0] }
  0xc5   :  { %1619 = vmatpush.bf16.msrb.mxu1 %v2594_v0  ;;  %v2511_v0 = vld [vmem:[#allocation5 + $0x218] sm:$0xf0]  ;;  %v3026_v18 = vor.u32 %v3481_v4, %v3023_v5  ;;  %v3113_v5 = vld [vmem:[#allocation8 + $0xa0] sm:$0xf]  ;;  %v3485_v57 = vld [vmem:[#allocation8 + $0x4] sm:$0xf0] }
  0xc6   :  { %1644 = vmatpush.bf16.msra.mxu2 %v2866_v62  ;;  %v2930_v62 = vor.u32 %v3457_v50, %v2927_v51  ;;  %v2514_v12 = vor.u32 %v3353_v63, %v2511_v0  ;;  %v3511_v46 = vld [vmem:[#allocation8 + $0xd4] sm:$0xf0] }
  0xc7   :  { %1631 = vmatpush.bf16.msra.mxu3 %v2738_v61  ;;  %v2783_v61 = vld [vmem:[#allocation5 + $0x438] sm:$0xf0]  ;;  %v1355_v7 = vpop.f32.mrf.mxu2 }
  0xc8   :  { %1658 = vmatpush.bf16.msra.mxu0 %v2978_v17  ;;  %v2914_v17 = vor.u32 %v3453_v1, %v2911_v3  ;;  %v3049_v1 = vld [vmem:[#allocation8 + $0x20] sm:$0xf]  ;;  %v3505_v7 = vld [vmem:[#allocation8 + $0xa4] sm:$0xf0] }
  0xc9   :  { %1620 = vmatpush.bf16.msrb.mxu1 %v2578_v13  ;;  %v2639_v13 = vld [vmem:[#allocation5 + $0x318] sm:$0xf0]  ;;  %v1368_v16 = vpop.f32.mrf.mxu3  ;;  %v3114_v14 = vor.u32 %v3505_v7, %v3113_v5  ;;  %v3488_v7 = vld [vmem:[#allocation8 + $0x24] sm:$0xf] }
  0xca   :  { %1645 = vmatpush.bf16.msra.mxu2 %v2850_v11  ;;  %v3385_v11 = vld [vmem:[#allocation5 + $0x30c] sm:$0xf]  ;;  %v3503_v16 = vld [vmem:[#allocation8 + $0x94] sm:$0xf0] }
  0xcb   :  { %1632 = vmatpush.bf16.msra.mxu3 %v2722_v10  ;;  %v2786_v10 = vor.u32 %v3421_v59, %v2783_v61  ;;  %v2642_v26 = vor.u32 %v3385_v11, %v2639_v13  ;;  %v3491_v59 = vld [vmem:[#allocation8 + $0x34] sm:$0xf0]  ;;  %v3121_v61 = vld [vmem:[#allocation8 + $0xb0] sm:$0xf] }
  0xcc   :  { %1659 = vmatpush.bf16.msra.mxu0 %v2962_v9  ;;  %v3487_v13 = vld [vmem:[#allocation8 + $0x14] sm:$0xf0] }
  0xcd   :  { %1621 = vmatpush.bf16.msrb.mxu1 %v2562_v25  ;;  %v302_v25 = vperm.slane %v3853_v6, 0 }
  0xce   :  { %1646 = vmatpush.bf16.msra.mxu2 %v2834_v23  ;;  %v3153_v23 = vld [vmem:[#allocation8 + $0xf0] sm:$0xf] }
  0xcf   :  { %1633 = vmatpush.bf16.msra.mxu3 %v2706_v22  ;;  %v2895_v22 = vld [vmem:[#allocation5 + $0x518] sm:$0xf0]  ;;  %v3154_v32 = vor.u32 %v3515_v24, %v3153_v23  ;;  %v1405_v38 = vpop.f32.mrf.mxu2  ;;  %v3091_v23 = vld [vmem:[#allocation8 + $0x78] sm:$0xf0]  ;;  %v3097_v24 = vld [vmem:[#allocation8 + $0x80] sm:$0xf] }
  0xd0   :  { %1660 = vmatpush.bf16.msra.mxu0 %v2946_v45  ;;  %v2898_v9 = vor.u32 %v3449_v21, %v2895_v22  ;;  %v3137_v45 = vld [vmem:[#allocation8 + $0xd0] sm:$0xf]  ;;  %v3498_v21 = vld [vmem:[#allocation8 + $0x74] sm:$0xf] }
  0xd1   :  { %1622 = vmatpush.bf16.msrb.mxu1 %v2546_v40  ;;  %v3082_v40 = vor.u32 %v3497_v31, %v3081_v30  ;;  %v3138_v50 = vor.u32 %v3511_v46, %v3137_v45  ;;  %v3094_v31 = vor.u32 %v3498_v21, %v3091_v23  ;;  %v3075_v45 = vld [vmem:[#allocation8 + $0x58] sm:$0xf0]  ;;  %v3486_v21 = vld [vmem:[#allocation8 + $0x14] sm:$0xf] }
  0xd2   :  { %1647 = vmatpush.bf16.msra.mxu2 %v2818_v37  ;;  %v1328_v37 = vadd.f32 %v3845_v20, %v302_v25  ;;  %v3065_v20 = vld [vmem:[#allocation8 + $0x40] sm:$0xf]  ;;  %v3501_v25 = vld [vmem:[#allocation8 + $0x84] sm:$0xf0]  ;;  %v3502_v23 = vld [vmem:[#allocation8 + $0x94] sm:$0xf] }
  0xd3   :  { %1634 = vmatpush.bf16.msra.mxu3 %v2690_v36  ;;  %v3513_v36 = vld [vmem:[#allocation8 + $0xe4] sm:$0xf0]  ;;  %v3066_v58 = vor.u32 %v3493_v49, %v3065_v20  ;;  %v3492_v49 = vld [vmem:[#allocation8 + $0x44] sm:$0xf] }
  0xd4   :  { %1661 = vmatpush.bf16.msra.mxu0 %v2930_v62  ;;  %v3146_v44 = vor.u32 %v3513_v36, %v3145_v33  ;;  %v1341_v47 = vadd.f32 %v3847_v29, %v1328_v37  ;;  %v3057_v29 = vld [vmem:[#allocation8 + $0x30] sm:$0xf]  ;;  %v3496_v33 = vld [vmem:[#allocation8 + $0x64] sm:$0xf]  ;;  %v3083_v36 = vld [vmem:[#allocation8 + $0x68] sm:$0xf0] }
  0xd5   :  { %1623 = vmatpush.bf16.msrb.mxu1 %v2530_v56  ;;  %v3058_v63 = vor.u32 %v3491_v59, %v3057_v29  ;;  %v3209_v29 = vld [vmem:[#allocation8 + $0x160] sm:$0xf]  ;;  %v3529_v59 = vld [vmem:[#allocation8 + $0x164] sm:$0xf0] }
  0xd6   :  { %1648 = vmatpush.bf16.msra.mxu2 %v2802_v54  ;;  %v3509_v54 = vld [vmem:[#allocation8 + $0xc4] sm:$0xf0]  ;;  %v1354_v55 = vadd.f32 %v3849_v35, %v1341_v47  ;;  %v3510_v47 = vld [vmem:[#allocation8 + $0xd4] sm:$0xf] }
  0xd7   :  { %1635 = vmatpush.bf16.msra.mxu3 %v2674_v52  ;;  %v3129_v52 = vld [vmem:[#allocation8 + $0xc0] sm:$0xf]  ;;  %v1407_v56 = vpop.f32.mrf.mxu2 }
  0xd8   :  { %1662 = vmatpush.bf16.msra.mxu0 %v2914_v17  ;;  %v1379_v51 = vpop.f32.mrf.mxu0  ;;  %v1367_v62 = vadd.f32 %v3851_v41, %v1354_v55  ;;  %v3217_v55 = vld [vmem:[#allocation8 + $0x170] sm:$0xf] }
  0xd9   :  { %1624 = vmatpush.bf16.msrb.mxu1 %v2514_v12  ;;  %v3041_v12 = vld [vmem:[#allocation8 + $0x10] sm:$0xf] }
  0xda   :  { %1649 = vmatpush.bf16.msra.mxu2 %v2786_v10  ;;  %v1380_v0 = vadd.f32 %v1379_v51, %v1367_v62  ;;  %v3050_v10 = vor.u32 %v3489_v2, %v3049_v1  ;;  %v3042_v17 = vor.u32 %v3487_v13, %v3041_v12  ;;  %v3490_v62 = vld [vmem:[#allocation8 + $0x34] sm:$0xf]  ;;  %v3210_v1 = vor.u32 %v3529_v59, %v3209_v29  ;;  %v3115_v13 = vld [vmem:[#allocation8 + $0xa8] sm:$0xf0]  ;;  %v3517_v29 = vld [vmem:[#allocation8 + $0x104] sm:$0xf0] }
  0xdb   :  { %1636 = vmatpush.bf16.msra.mxu3 %v2658_v8  ;;  %v3506_v2 = vld [vmem:[#allocation8 + $0xb4] sm:$0xf] }
  0xdc   :  { %1625 = vmatmul.bf16.vlgmr.msrb.gmra.mxu1 %v3805_v53  ;;  %1663 = vmatpush.bf16.msra.mxu0 %v2898_v9  ;;  %v3074_v53 = vor.u32 %v3495_v43, %v3073_v42  ;;  %v3086_v43 = vor.u32 %v3496_v33, %v3083_v36  ;;  %v3500_v33 = vld [vmem:[#allocation8 + $0x84] sm:$0xf]  ;;  %v3523_v36 = vld [vmem:[#allocation8 + $0x134] sm:$0xf0] }
  0xdd   :  { %1676 = vmatpush.bf16.msra.mxu1 %v3026_v18 }
  0xde   :  { %1650 = vmatpush.bf16.msra.mxu2 %v2770_v27  ;;  %v3155_v27 = vld [vmem:[#allocation8 + $0xf8] sm:$0xf0] }
  0xdf   :  { %1637 = vmatpush.bf16.msra.mxu3 %v2642_v26  ;;  %1664 = vmatmul.bf16.vlgmr.msra.gmra.mxu0 %v3823_v39  ;;  %v3507_v39 = vld [vmem:[#allocation8 + $0xb4] sm:$0xf0]  ;;  %v3514_v26 = vld [vmem:[#allocation8 + $0xf4] sm:$0xf] }
  0xe0   :  { %v3122_v3 = vor.u32 %v3507_v39, %v3121_v61  ;;  %v1381_v4 = vpop.f32.mrf.mxu0  ;;  %v3158_v37 = vor.u32 %v3514_v26, %v3155_v27  ;;  %v303_v61 = vperm.slane %v3853_v6, 1  ;;  %v3525_v26 = vld [vmem:[#allocation8 + $0x144] sm:$0xf0] }
  0xe1   :  { %2093 = vmatpush.bf16.msrb.mxu1 %v3154_v32  ;;  %1651 = vmatmul.bf16.vlgmr.msra.gmra.mxu2 %v3821_v34  ;;  %v3130_v34 = vor.u32 %v3509_v54, %v3129_v52  ;;  %v3864_v35 = vpop.f32.mrf.mxu3  ;;  %v3098_v32 = vor.u32 %v3501_v25, %v3097_v24  ;;  %v3508_v52 = vld [vmem:[#allocation8 + $0xc4] sm:$0xf]  ;;  %v3131_v54 = vld [vmem:[#allocation8 + $0xc8] sm:$0xf0]  ;;  %v3107_v24 = vld [vmem:[#allocation8 + $0x98] sm:$0xf0] }
  0xe2   :  { %1638 = vmatmul.bf16.vlgmr.msra.gmra.mxu3 %v3809_v60  ;;  %v1392_v60 = vpop.f32.mrf.mxu1  ;;  %v1419_v5 = vadd.f32 %v3864_v35, %v303_v61  ;;  %v3193_v25 = vld [vmem:[#allocation8 + $0x140] sm:$0xf]  ;;  %v3530_v61 = vld [vmem:[#allocation8 + $0x174] sm:$0xf] }
  0xe3   :  { %2080 = vmatpush.bf16.msrb.mxu3 %v3090_v28  ;;  %v1393_v41 = vadd.f32 %v1392_v60, %v1380_v0  ;;  %v3034_v28 = vor.u32 %v3485_v57, %v3033_v19  ;;  %v3531_v60 = vld [vmem:[#allocation8 + $0x174] sm:$0xf0]  ;;  %v3134_v0 = vor.u32 %v3508_v52, %v3131_v54 }
  0xe4   :  { %v3868_v11 = vpop.f32.mrf.mxu2 }
  0xe5   :  { %2094 = vmatpush.bf16.msrb.mxu1 %v3146_v44  ;;  %v1406_v18 = vadd.f32 %v1405_v38, %v1393_v41  ;;  %v3512_v38 = vld [vmem:[#allocation8 + $0xe4] sm:$0xf]  ;;  %v3494_v44 = vld [vmem:[#allocation8 + $0x54] sm:$0xf]  ;;  %v1432_v57 = vadd.f32 %v3868_v11, %v1419_v5  ;;  %v3185_v11 = vld [vmem:[#allocation8 + $0x130] sm:$0xf] }
  0xe6   :  { %v3078_v20 = vor.u32 %v3494_v44, %v3075_v45  ;;  %v3504_v41 = vld [vmem:[#allocation8 + $0xa4] sm:$0xf]  ;;  %v3521_v44 = vld [vmem:[#allocation8 + $0x124] sm:$0xf0] }
  0xe7   :  { %2081 = vmatpush.bf16.msrb.mxu3 %v3082_v40  ;;  %v1682_v30 = vmax.f32 %v1406_v18, 0.0  ;;  %v3147_v40 = vld [vmem:[#allocation8 + $0xe8] sm:$0xf0] }
  0xe8   :  { %v3150_v46 = vor.u32 %v3512_v38, %v3147_v40  ;;  %v3099_v38 = vld [vmem:[#allocation8 + $0x88] sm:$0xf0]  ;;  %v3186_v40 = vor.u32 %v3523_v36, %v3185_v11 }
  0xe9   :  { %2095 = vmatpush.bf16.msrb.mxu1 %v3138_v50  ;;  %v1420_v22 = vpop.f32.mrf.mxu3  ;;  %v3870_v42 = vpack.c.bf16 %v1682_v30, %v1682_v30  ;;  %v3067_v50 = vld [vmem:[#allocation8 + $0x48] sm:$0xf0]  ;;  %v3484_v30 = vld [vmem:[#allocation8 + $0x4] sm:$0xf] }
  0xea   :  { %v1394_v8 = vpop.f32.mrf.mxu1  ;;  %v3118_v22 = vor.u32 %v3504_v41, %v3115_v13  ;;  %v3545_v13 = vld [vmem:[#allocation8 + $0x1e4] sm:$0xf0] }
  0xeb   :  { %2082 = vmatpush.bf16.msrb.mxu3 %v3074_v53  ;;  %v3139_v53 = vld [vmem:[#allocation8 + $0xd8] sm:$0xf0]  ;;  %v3051_v8 = vld [vmem:[#allocation8 + $0x28] sm:$0xf0] }
  0xec   :  { %3030 = vmatmul.msk.bf16.vlgmr.msra.gmra.mxu1 %vm1314_vm0, %v3817_v48  ;;  %v3106_v48 = vor.u32 %v3503_v16, %v3105_v15  ;;  %v1433_v9 = vpop.f32.mrf.mxu2  ;;  %v3142_v51 = vor.u32 %v3510_v47, %v3139_v53  ;;  %v3527_v15 = vld [vmem:[#allocation8 + $0x154] sm:$0xf0]  ;;  %v3054_v19 = vor.u32 %v3488_v7, %v3051_v8  ;;  %v3526_v8 = vld [vmem:[#allocation8 + $0x154] sm:$0xf] }
  0xed   :  { %2096 = vmatpush.bf16.msrb.mxu1 %v3130_v34  ;;  %v3070_v34 = vor.u32 %v3492_v49, %v3067_v50  ;;  %v3169_v50 = vld [vmem:[#allocation8 + $0x110] sm:$0xf] }
  0xef   :  { %2083 = vmatpush.bf16.msrb.mxu3 %v3066_v58  ;;  %v3218_v58 = vor.u32 %v3531_v60, %v3217_v55 }
  0xf1   :  { %2097 = vmatpush.bf16.msrb.mxu1 %v3122_v3  ;;  %2106 = vmatpush.bf16.msrb.mxu2 %v3218_v58  ;;  %v3123_v3 = vld [vmem:[#allocation8 + $0xb8] sm:$0xf0]  ;;  %v3161_v58 = vld [vmem:[#allocation8 + $0x100] sm:$0xf] }
  0xf3   :  { %2084 = vmatpush.bf16.msrb.mxu3 %v3058_v63  ;;  %v3059_v63 = vld [vmem:[#allocation8 + $0x38] sm:$0xf0] }
  0xf4   :  { %v3062_v4 = vor.u32 %v3490_v62, %v3059_v63  ;;  %v3528_v62 = vld [vmem:[#allocation8 + $0x164] sm:$0xf] }
  0xf5   :  { %2098 = vmatpush.bf16.msrb.mxu1 %v3114_v14  ;;  %2107 = vmatpush.bf16.msrb.mxu2 %v3210_v1  ;;  %v3201_v14 = vld [vmem:[#allocation8 + $0x150] sm:$0xf] }
  0xf6   :  { %v3281_v1 = vld [vmem:[#allocation8 + $0x1f0] sm:$0xf] }
  0xf7   :  { %2085 = vmatpush.bf16.msrb.mxu3 %v3050_v10  ;;  %v3126_v10 = vor.u32 %v3506_v2, %v3123_v3  ;;  %v3547_v2 = vld [vmem:[#allocation8 + $0x1f4] sm:$0xf0] }
  0xf8   :  { %v1444_v56 = vpop.f32.mrf.mxu0  ;;  %v3282_v3 = vor.u32 %v3547_v2, %v3281_v1  ;;  %v3544_v2 = vld [vmem:[#allocation8 + $0x1e4] sm:$0xf] }
  0xf9   :  { %2099 = vmatpush.bf16.msrb.mxu1 %v3106_v48  ;;  %v1457_v39 = vpop.f32.mrf.mxu1  ;;  %v3043_v48 = vld [vmem:[#allocation8 + $0x18] sm:$0xf0]  ;;  %v1445_v27 = vadd.f32 %v1444_v56, %v1432_v57 }
  0xfa   :  { %v3046_v9 = vor.u32 %v3486_v21, %v3043_v48  ;;  %2119 = vmatpush.bf16.msrb.mxu0 %v3282_v3  ;;  %v3265_v48 = vld [vmem:[#allocation8 + $0x1d0] sm:$0xf]  ;;  %v3275_v3 = vld [vmem:[#allocation8 + $0x1e8] sm:$0xf0] }
  0xfb   :  { %2086 = vmatpush.bf16.msrb.mxu3 %v3042_v17  ;;  %v3202_v17 = vor.u32 %v3527_v15, %v3201_v14  ;;  %v1458_v45 = vadd.f32 %v1457_v39, %v1445_v27  ;;  %v3219_v39 = vld [vmem:[#allocation8 + $0x178] sm:$0xf0]  ;;  %v3541_v27 = vld [vmem:[#allocation8 + $0x1c4] sm:$0xf0] }
  0xfc   :  { %v3222_v63 = vor.u32 %v3530_v61, %v3219_v39  ;;  %v3546_v39 = vld [vmem:[#allocation8 + $0x1f4] sm:$0xf] }
  0xfd   :  { %2100 = vmatpush.bf16.msrb.mxu1 %v3098_v32  ;;  %2108 = vmatpush.bf16.msrb.mxu2 %v3202_v17  ;;  %v3110_v32 = vor.u32 %v3502_v23, %v3107_v24  ;;  %v3524_v17 = vld [vmem:[#allocation8 + $0x144] sm:$0xf]  ;;  %v3522_v23 = vld [vmem:[#allocation8 + $0x134] sm:$0xf]  ;;  %v3187_v24 = vld [vmem:[#allocation8 + $0x138] sm:$0xf0] }
  0xff   :  { %2087 = vmatpush.bf16.msrb.mxu3 %v3034_v28  ;;  %v3194_v28 = vor.u32 %v3525_v26, %v3193_v25  ;;  %v3190_v25 = vor.u32 %v3522_v23, %v3187_v24  ;;  %v3257_v26 = vld [vmem:[#allocation8 + $0x1c0] sm:$0xf]  ;;  %v3536_v24 = vld [vmem:[#allocation8 + $0x1a4] sm:$0xf] }
 0x100   :  { %v1446_v16 = vpop.f32.mrf.mxu0 }
 0x101   :  { %2145 = vmatpush.bf16.msra.mxu1 %v3158_v37  ;;  %v1470_v12 = vpop.f32.mrf.mxu3  ;;  %v1459_v35 = vpop.f32.mrf.mxu1  ;;  %2109 = vmatpush.bf16.msrb.mxu2 %v3194_v28  ;;  %v3520_v28 = vld [vmem:[#allocation8 + $0x124] sm:$0xf] }
 0x102   :  { %2088 = vmatmul.bf16.vlgmr.msrb.gmra.mxu3 %v3870_v42  ;;  %v1471_v53 = vadd.f32 %v1470_v12, %v1458_v45  ;;  %v3273_v12 = vld [vmem:[#allocation8 + $0x1e0] sm:$0xf]  ;;  %v3543_v35 = vld [vmem:[#allocation8 + $0x1d4] sm:$0xf0] }
 0x103   :  { %2132 = vmatpush.bf16.msra.mxu3 %v3094_v31  ;;  %v3035_v31 = vld [vmem:[#allocation8 + $0x8] sm:$0xf0]  ;;  %v3274_v14 = vor.u32 %v3545_v13, %v3273_v12  ;;  %v3241_v45 = vld [vmem:[#allocation8 + $0x1a0] sm:$0xf]  ;;  %v3267_v12 = vld [vmem:[#allocation8 + $0x1d8] sm:$0xf0] }
 0x104   :  { %v1483_v18 = vpop.f32.mrf.mxu2 }
 0x105   :  { %2146 = vmatpush.bf16.msra.mxu1 %v3150_v46  ;;  %v3038_v46 = vor.u32 %v3484_v30, %v3035_v31  ;;  %2110 = vmatpush.bf16.msrb.mxu2 %v3186_v40  ;;  %v1484_v52 = vadd.f32 %v1483_v18, %v1471_v53  ;;  %v3195_v18 = vld [vmem:[#allocation8 + $0x148] sm:$0xf0]  ;;  %v3249_v31 = vld [vmem:[#allocation8 + $0x1b0] sm:$0xf]  ;;  %v3171_v40 = vld [vmem:[#allocation8 + $0x118] sm:$0xf0] }
 0x106   :  { %2120 = vmatpush.bf16.msrb.mxu0 %v3274_v14  ;;  %v3198_v21 = vor.u32 %v3524_v17, %v3195_v18  ;;  %v3179_v30 = vld [vmem:[#allocation8 + $0x128] sm:$0xf0]  ;;  %v3540_v17 = vld [vmem:[#allocation8 + $0x1c4] sm:$0xf] }
 0x107   :  { %2133 = vmatpush.bf16.msra.mxu3 %v3086_v43  ;;  %v3177_v43 = vld [vmem:[#allocation8 + $0x120] sm:$0xf]  ;;  %v3182_v36 = vor.u32 %v3520_v28, %v3179_v30  ;;  %v3259_v18 = vld [vmem:[#allocation8 + $0x1c8] sm:$0xf0]  ;;  %v3235_v28 = vld [vmem:[#allocation8 + $0x198] sm:$0xf0] }
 0x108   :  { %v3178_v49 = vor.u32 %v3521_v44, %v3177_v43  ;;  %v304_v43 = vperm.slane %v3853_v6, 2 }
 0x109   :  { %2147 = vmatpush.bf16.msra.mxu1 %v3142_v51  ;;  %v1472_v37 = vpop.f32.mrf.mxu3  ;;  %v3519_v51 = vld [vmem:[#allocation8 + $0x114] sm:$0xf0] }
 0x10a   :  { %2111 = vmatpush.bf16.msrb.mxu2 %v3178_v49  ;;  %v3170_v54 = vor.u32 %v3519_v51, %v3169_v50  ;;  %v3516_v50 = vld [vmem:[#allocation8 + $0x104] sm:$0xf]  ;;  %v3163_v51 = vld [vmem:[#allocation8 + $0x108] sm:$0xf0] }
 0x10b   :  { %2134 = vmatpush.bf16.msra.mxu3 %v3078_v20  ;;  %v3102_v20 = vor.u32 %v3500_v33, %v3099_v38  ;;  %v3518_v38 = vld [vmem:[#allocation8 + $0x114] sm:$0xf] }
 0x10c   :  { %v1485_v47 = vpop.f32.mrf.mxu2 }
 0x10d   :  { %2148 = vmatpush.bf16.msra.mxu1 %v3134_v0  ;;  %v3211_v0 = vld [vmem:[#allocation8 + $0x168] sm:$0xf0]  ;;  %v3174_v47 = vor.u32 %v3518_v38, %v3171_v40 }
 0x10e   :  { %2112 = vmatpush.bf16.msrb.mxu2 %v3170_v54  ;;  %v3166_v54 = vor.u32 %v3516_v50, %v3163_v51 }
 0x10f   :  { %2135 = vmatpush.bf16.msra.mxu3 %v3070_v34  ;;  %v3162_v34 = vor.u32 %v3517_v29, %v3161_v58 }
 0x111   :  { %2149 = vmatpush.bf16.msra.mxu1 %v3126_v10  ;;  %v1496_v55 = vpop.f32.mrf.mxu3  ;;  %v3203_v10 = vld [vmem:[#allocation8 + $0x158] sm:$0xf0] }
 0x112   :  { %v1497_v60 = vadd.f32 %v1496_v55, %v1484_v52  ;;  %2113 = vmatpush.bf16.msrb.mxu2 %v3162_v34  ;;  %v3206_v41 = vor.u32 %v3526_v8, %v3203_v10  ;;  %v3233_v55 = vld [vmem:[#allocation8 + $0x190] sm:$0xf]  ;;  %v3533_v34 = vld [vmem:[#allocation8 + $0x184] sm:$0xf0] }
 0x113   :  { %2136 = vmatpush.bf16.msra.mxu3 %v3062_v4 }
 0x114   :  { %v1683_v56 = vmax.f32 %v1497_v60, 0.0  ;;  %v3535_v60 = vld [vmem:[#allocation8 + $0x194] sm:$0xf0] }
 0x115   :  { %2150 = vmatpush.bf16.msra.mxu1 %v3118_v22  ;;  %v3266_v22 = vor.u32 %v3543_v35, %v3265_v48  ;;  %v3538_v35 = vld [vmem:[#allocation8 + $0x1b4] sm:$0xf] }
 0x116   :  { %v1687_v59 = vpack.c.bf16 %v1683_v56, %v1683_v56  ;;  %2158 = vmatpush.bf16.msra.mxu2 %v3222_v63  ;;  %v3234_v56 = vor.u32 %v3535_v60, %v3233_v55 }
 0x117   :  { %2137 = vmatpush.bf16.msra.mxu3 %v3054_v19  ;;  %2121 = vmatpush.bf16.msrb.mxu0 %v3266_v22  ;;  %v3251_v22 = vld [vmem:[#allocation8 + $0x1b8] sm:$0xf0] }
 0x118   :  { %2101 = vmatmul.bf16.vlgmr.msrb.gmra.mxu1 %v1687_v59  ;;  %v3877_v5 = vpop.f32.mrf.mxu0  ;;  %v3254_v23 = vor.u32 %v3538_v35, %v3251_v22 }
 0x119   :  { %2151 = vmatpush.bf16.msra.mxu1 %v3110_v32  ;;  %v1498_v4 = vpop.f32.mrf.mxu3  ;;  %v1509_v7 = vpop.f32.mrf.mxu1  ;;  %v3539_v32 = vld [vmem:[#allocation8 + $0x1b4] sm:$0xf0] }
 0x11a   :  { %v3250_v37 = vor.u32 %v3539_v32, %v3249_v31  ;;  %v3532_v31 = vld [vmem:[#allocation8 + $0x184] sm:$0xf]  ;;  %v3227_v32 = vld [vmem:[#allocation8 + $0x188] sm:$0xf0] }
 0x11b   :  { %2138 = vmatpush.bf16.msra.mxu3 %v3046_v9  ;;  %v3258_v9 = vor.u32 %v3541_v27, %v3257_v26  ;;  %v3534_v27 = vld [vmem:[#allocation8 + $0x194] sm:$0xf] }
 0x11c   :  { %v3238_v30 = vor.u32 %v3534_v27, %v3235_v28 }
 0x11d   :  { %2152 = vmatpush.bf16.msra.mxu1 %v3102_v20  ;;  %2122 = vmatpush.bf16.msrb.mxu0 %v3258_v9  ;;  %v1510_v20 = vadd.f32 %v1509_v7, %v304_v43  ;;  %v3278_v7 = vor.u32 %v3544_v2, %v3275_v3  ;;  %v305_v9 = vperm.slane %v3853_v6, 3 }
 0x11f   :  { %2139 = vmatpush.bf16.msra.mxu3 %v3038_v46  ;;  %v3537_v46 = vld [vmem:[#allocation8 + $0x1a4] sm:$0xf0] }
 0x120   :  { %v1537_v16 = vpop.f32.mrf.mxu0  ;;  %v3242_v53 = vor.u32 %v3537_v46, %v3241_v45 }
 0x121   :  { %v1511_v57 = vpop.f32.mrf.mxu1  ;;  %2123 = vmatpush.bf16.msrb.mxu0 %v3250_v37 }
 0x122   :  { %2140 = vmatmul.bf16.vlgmr.msra.gmra.mxu3 %v3870_v42  ;;  %v3214_v42 = vor.u32 %v3528_v62, %v3211_v0  ;;  %v3283_v62 = vld [vmem:[#allocation8 + $0x1f8] sm:$0xf0]  ;;  %v3262_v57 = vor.u32 %v3540_v17, %v3259_v18 }
 0x123   :  { %v3286_v63 = vor.u32 %v3546_v39, %v3283_v62 }
 0x124   :  { %2159 = vmatpush.bf16.msra.mxu2 %v3214_v42  ;;  %v1548_v19 = vpop.f32.mrf.mxu2 }
 0x125   :  { %v1522_v15 = vpop.f32.mrf.mxu3  ;;  %2124 = vmatpush.bf16.msrb.mxu0 %v3242_v53 }
 0x126   :  { %v1523_v52 = vadd.f32 %v1522_v15, %v1510_v20 }
 0x128   :  { %2160 = vmatpush.bf16.msra.mxu2 %v3206_v41  ;;  %2153 = vmatmul.bf16.vlgmr.msra.gmra.mxu1 %v1687_v59  ;;  %v1587_v11 = vpop.f32.mrf.mxu0  ;;  %v1536_v29 = vadd.f32 %v3877_v5, %v1523_v52  ;;  %v3225_v59 = vld [vmem:[#allocation8 + $0x180] sm:$0xf]  ;;  %v3542_v5 = vld [vmem:[#allocation8 + $0x1d4] sm:$0xf] }
 0x129   :  { %2125 = vmatpush.bf16.msrb.mxu0 %v3234_v56  ;;  %v3226_v61 = vor.u32 %v3533_v34, %v3225_v59  ;;  %v3270_v14 = vor.u32 %v3542_v5, %v3267_v12 }
 0x12a   :  { %v1549_v0 = vadd.f32 %v1548_v19, %v1536_v29 }
 0x12c   :  { %2161 = vmatpush.bf16.msra.mxu2 %v3198_v21  ;;  %v1550_v44 = vpop.f32.mrf.mxu2 }
 0x12d   :  { %v1524_v33 = vpop.f32.mrf.mxu3  ;;  %2126 = vmatpush.bf16.msrb.mxu0 %v3226_v61 }
 0x130   :  { %2162 = vmatpush.bf16.msra.mxu2 %v3190_v25  ;;  %v1589_v49 = vpop.f32.mrf.mxu0  ;;  %v3243_v25 = vld [vmem:[#allocation8 + $0x1a8] sm:$0xf0] }
 0x131   :  { %2171 = vmatpush.bf16.msra.mxu0 %v3286_v63  ;;  %v3246_v26 = vor.u32 %v3536_v24, %v3243_v25 }
 0x134   :  { %2163 = vmatpush.bf16.msra.mxu2 %v3182_v36  ;;  %v3230_v36 = vor.u32 %v3532_v31, %v3227_v32 }
 0x135   :  { %2172 = vmatpush.bf16.msra.mxu0 %v3278_v7 }
 0x138   :  { %2164 = vmatpush.bf16.msra.mxu2 %v3174_v47 }
 0x139   :  { %v1561_v58 = vpop.f32.mrf.mxu1  ;;  %2173 = vmatpush.bf16.msra.mxu0 %v3270_v14 }
 0x13a   :  { %v1562_v4 = vadd.f32 %v1561_v58, %v1549_v0  ;;  %v1754_v58 = vld [vmem:[%s3895_s4] sm:$0x3]  ;;  %s3748_s4 = smov [#allocation11]  }
 0x13b   :  { %v1756_v29 = vperm.slane %v1754_v58, 0  ;;  %v1757_v0 = vperm.slane %v1754_v58, 1  ;;  %s2213_s27 = sshll.u32 %s3748_s4, 4  ;;  %s2214_s27 = int_to_ptr.vmem [resolvable:$true] %s2213_s27 }
 0x13c   :  { %2165 = vmatpush.bf16.msra.mxu2 %v3166_v54  ;;  %v1613_v1 = vpop.f32.mrf.mxu0 }
 0x13d   :  { %2174 = vmatpush.bf16.msra.mxu0 %v3262_v57  ;;  %v2195_v57 = vlaneseq }
 0x141   :  { %v1563_v42 = vpop.f32.mrf.mxu1  ;;  %2175 = vmatpush.bf16.msra.mxu0 %v3254_v23  ;;  %v2196_v23 = vand.u32 127, %v2195_v57 }
 0x143   :  { %vm2197_vm1 = vcmp.lt.s32.totalorder %v2196_v23, 3 }
 0x144   :  { %v1600_v41 = vpop.f32.mrf.mxu2  ;;  %v1615_v16 = vpop.f32.mrf.mxu0 }
 0x145   :  { %v1574_v8 = vpop.f32.mrf.mxu3  ;;  %2176 = vmatpush.bf16.msra.mxu0 %v3246_v26  ;;  %v1601_v33 = vadd.f32 %v1600_v41, %v305_v9 }
 0x146   :  { %v1575_v10 = vadd.f32 %v1574_v8, %v1562_v4 }
 0x147   :  { %v1614_v37 = vadd.f32 %v1613_v1, %v1601_v33 }
 0x148   :  { %v1588_v13 = vadd.f32 %v1587_v11, %v1575_v10 }
 0x149   :  { %2177 = vmatpush.bf16.msra.mxu0 %v3238_v30 }
 0x14a   :  { %v1684_v15 = vmax.f32 %v1588_v13, 0.0 }
 0x14c   :  { %v1688_v19 = vpack.c.bf16 %v1684_v15, %v1684_v15  ;;  %v1602_v48 = vpop.f32.mrf.mxu2 }
 0x14d   :  { %v1576_v21 = vpop.f32.mrf.mxu3  ;;  %2178 = vmatpush.bf16.msra.mxu0 %v3230_v36 }
 0x14e   :  { %2114 = vmatmul.bf16.vlgmr.msrb.gmra.mxu2 %v1688_v19 }
 0x159   :  { %v1626_v11 = vpop.f32.mrf.mxu1 }
 0x15a   :  { %v1627_v40 = vadd.f32 %v1626_v11, %v1614_v37 }
 0x15c   :  { %v1665_v38 = vpop.f32.mrf.mxu0 }
 0x15e   :  { %2166 = vmatmul.bf16.vlgmr.msra.gmra.mxu2 %v1688_v19  ;;  %v2186_v19 = vld [vmem:[#allocation10] sm:$0xff] }
 0x161   :  { %v1628_v43 = vpop.f32.mrf.mxu1 }
 0x164   :  { %v1652_v46 = vpop.f32.mrf.mxu2  ;;  %v1667_v53 = vpop.f32.mrf.mxu0 }
 0x165   :  { %v1639_v44 = vpop.f32.mrf.mxu3 }
 0x166   :  { %v1640_v45 = vadd.f32 %v1639_v44, %v1627_v40 }
 0x168   :  { %v1653_v47 = vadd.f32 %v1652_v46, %v1640_v45 }
 0x169   :  { %v1678_v20 = vpop.f32.mrf.mxu1 }
 0x16a   :  { %v1666_v6 = vadd.f32 %v1665_v38, %v1653_v47 }
 0x16c   :  { %v1679_v49 = vadd.f32 %v1678_v20, %v1666_v6  ;;  %v1654_v51 = vpop.f32.mrf.mxu2 }
 0x16d   :  { %v1641_v50 = vpop.f32.mrf.mxu3 }
 0x16e   :  { %v1685_v52 = vmax.f32 %v1679_v49, 0.0 }
 0x170   :  { %v1689_v54 = vpack.c.bf16 %v1685_v52, %v1685_v52 }
 0x171   :  { %v1680_v55 = vpop.f32.mrf.mxu1 }
 0x172   :  { %2127 = vmatmul.bf16.vlgmr.msrb.gmra.mxu0 %v1689_v54 }
 0x182   :  { %2179 = vmatmul.bf16.vlgmr.msra.gmra.mxu0 %v1689_v54 }
 0x185   :  { %v2089_v60 = vpop.f32.mrf.mxu3 }
 0x186   :  { %v2090_v59 = vadd.f32 %v2089_v60, %v1756_v29 }
 0x18d   :  { %v2091_v56 = vpop.f32.mrf.mxu3 }
 0x195   :  { %v2102_v34 = vpop.f32.mrf.mxu1 }
 0x196   :  { %v2103_v39 = vadd.f32 %v2102_v34, %v2090_v59 }
 0x19d   :  { %v2104_v62 = vpop.f32.mrf.mxu1 }
 0x1a5   :  { %v2141_v61 = vpop.f32.mrf.mxu3  ;;  %v2154_v2 = vpop.f32.mrf.mxu1 }
 0x1a6   :  { %v2142_v1 = vadd.f32 %v2141_v61, %v1757_v0 }
 0x1a8   :  { %v2155_v3 = vadd.f32 %v2154_v2, %v2142_v1 }
 0x1ad   :  { %v2143_v63 = vpop.f32.mrf.mxu3  ;;  %v2156_v4 = vpop.f32.mrf.mxu1 }
 0x1d1   :  { %v2115_v42 = vpop.f32.mrf.mxu2 }
 0x1d2   :  { %v2116_v16 = vadd.f32 %v2115_v42, %v2103_v39 }
 0x1d9   :  { %v2117_v7 = vpop.f32.mrf.mxu2 }
 0x1e1   :  { %v2167_v8 = vpop.f32.mrf.mxu2 }
 0x1e2   :  { %v2168_v12 = vadd.f32 %v2167_v8, %v2155_v3 }
 0x1e9   :  { %v2169_v10 = vpop.f32.mrf.mxu2 }
 0x1ef   :  { %v2128_v41 = vpop.f32.mrf.mxu0 }
 0x1f0   :  { %v2129_v17 = vadd.f32 %v2128_v41, %v2116_v16 }
 0x1f2   :  { %v2201_v48 = vmul.f32 %v2129_v17, %v2129_v17 }
 0x1f7   :  { %v2130_v5 = vpop.f32.mrf.mxu0 }
 0x1ff   :  { %v2180_v13 = vpop.f32.mrf.mxu0 }
 0x200   :  { %v2181_v14 = vadd.f32 %v2180_v13, %v2168_v12 }
 0x202   :  { %v2184_v15 = vmul.f32 1.442695, %v2181_v14 }
 0x204   :  { %3559 = vpow2.f32 %v2184_v15 }
 0x207   :  { %v2182_v18 = vpop.f32.mrf.mxu0 }
 0x20a   :  { %v3560_v21 = vpop.eup %3559 }
 0x20b   :  { %v2200_v35 = vmul.f32 %v3560_v21, %v3560_v21  ;;  %v2187_v22 = vmul.f32 %v3560_v21, %v2186_v19 }
 0x20d   :  { %v2202_v24 = vadd.f32 %v2201_v48, %v2200_v35  ;;  %v2188_v25 = vadd.f32 %v2187_v22, %v2129_v17 }
 0x20f   :  { %v2203_v26 = vsub.f32 %v2202_v24, %v2181_v14  ;;  %2189 = vst [vmem:[#allocation11] sm:$0xff] %v2188_v25 }
 0x210   :  { %2218 = dma.vmem_to_hbm [thread:$0]  %s2214_s27, 128, %s2216_s30, [#allocation4]  }
 0x211   :  { %v3287_v27 = vadd.f32 -0.5, %v2203_v26 }
 0x213   :  { %v2205_v28 = vsel %vm2197_vm1, %v3287_v27, 0.0 }
 0x214   :  { %2207 = vst [vmem:[#allocation12] sm:$0xff] %v2205_v28 }
 0x215   :  { %2229 = dma.vmem_to_hbm [thread:$0]  %s2225_s9, 128, %s2227_s12, [#allocation13]  }
 0x216   :  { %3735 = dma.done.wait [#allocation4], 128  }
 0x217   :  { %3736 = vsyncadd [#allocation4], 4294967168 }
 0x218   :  { %3737 = dma.done.wait [#allocation13], 128  }
 0x219   :  { %3738 = vsyncadd [#allocation13], 4294967168 }
 0x21a   :  { %2238 = vsyncpa [#allocation3], 1 }
 0x21b   :  { %2239 = vsyncpa [#allocation6], 1 }
 0x21c   :  { %2240 = vsyncpa [#allocation9], 1 }
 0x21d   :  { %2241 = vsyncpa [#allocation4], 1 }
 0x21e   :  { %2242 = vsyncpa [#allocation13], 1 }

</bundles_post_ra>
